<compile_context>
chip_gen: v6e
topology: v6e:2x2x1
jax: 0.10.0
libtpu: 0.0.40
codegen_flags: <defaults>
</compile_context>

<pallas_src>
import math
import functools

import jax
import jax.numpy as jnp
from jax import lax
from jax.experimental import pallas as pl
from jax.experimental.pallas import tpu as pltpu

EPS = 1e-5         # nn.LayerNorm default eps
NEG_BIG = -1e30    # finite "minus infinity" so fully-masked rows can't NaN

_STACK_ORDER = ('sa_wqkv', 'sa_bqkv', 'sa_wo', 'sa_bo', 'ln1_g', 'ln1_b',
                'ca_wq', 'ca_bq', 'ca_wkv', 'ca_bkv', 'ca_wo', 'ca_bo',
                'ln2_g', 'ln2_b', 'w1', 'b1', 'w2', 'b2', 'ln3_g', 'ln3_b')
_BF16_WEIGHTS = ('sa_wqkv', 'sa_wo', 'ca_wq', 'ca_wkv', 'ca_wo', 'w1', 'w2')


# --------------------------- in-kernel helpers -------------------------------

def _softmax_lastdim(s):
    m = jnp.max(s, axis=-1, keepdims=True)
    p = jnp.exp(s - m)
    # divide via the EUP reciprocal slot (free when MXU/VPU is the bottleneck)
    return p * pl.reciprocal(jnp.sum(p, axis=-1, keepdims=True), approx=True)


def _mha(q, k, v, mask, nhead, dh):
    # q,k,v: [Bt, Tq|Tk, D] bf16 (q pre-scaled); mask: None or [Bt, Tq, Tk] f32.
    heads = []
    for h in range(nhead):                 # unrolled; nhead is small & static
        lo = h * dh
        # TODO(synk): dh is not a multiple of 128 at this toy size, so these
        # lane-offset slices relayout; production configs should use dh%128==0.
        s = jnp.einsum('btd,bsd->bts', q[..., lo:lo + dh], k[..., lo:lo + dh],
                       preferred_element_type=jnp.float32)
        if mask is not None:
            s = s + mask
        p = _softmax_lastdim(s).astype(v.dtype)
        heads.append(jnp.einsum('bts,bsd->btd', p, v[..., lo:lo + dh],
                                preferred_element_type=jnp.float32))
    # concat heads once -> one [M,D]@[D,D] out-projection by the caller
    return jnp.concatenate(heads, axis=-1)                 # [Bt, Tq, D] f32


def _add_ln(x, r, g, b):
    # post-norm residual: LayerNorm(x + r), f32 math
    y = x + r
    mu = jnp.mean(y, axis=-1, keepdims=True)
    d = y - mu
    var = jnp.mean(d * d, axis=-1, keepdims=True)
    return d * lax.rsqrt(var + EPS) * g + b


# --------------------------- fused decoder stack ------------------------------

def _decoder_stack_kernel(tgt_ref, mem_ref, causal_ref, pad_ref,
                          sa_wqkv, sa_bqkv, sa_wo, sa_bo, ln1_g, ln1_b,
                          ca_wq, ca_bq, ca_wkv, ca_bkv, ca_wo, ca_bo,
                          ln2_g, ln2_b, w1, b1, w2, b2, ln3_g, ln3_b,
                          o_ref, *, nhead):
    layer = pl.program_id(1)

    @pl.when(layer == 0)
    def _():                          # seed the resident activations from tgt
        o_ref[...] = tgt_ref[...]

    x = o_ref[...]                    # [Bt, T, D] f32, resident across layers
    bt, T, D = x.shape
    mem = mem_ref[...]                # [Bt, S, D] f32
    S = mem.shape[1]
    M, MS = bt * T, bt * S
    dh = D // nhead
    scale = 1.0 / math.sqrt(dh)

    # combined causal [T,T] + key-padding [Bt,1,T] mask, clamped finite
    mask = jnp.maximum(causal_ref[...][None, :, :] + pad_ref[...], NEG_BIG)

    def mm(a, w_ref, b_ref):          # bf16 MXU dot, f32 accumulate + f32 bias
        r = jnp.dot(a.astype(jnp.bfloat16), w_ref[...],
                    preferred_element_type=jnp.float32)
        return r + b_ref[...]

    # ---- self-attention: fused QKV projection on [Bt*T, D] rows -------------
    xm = x.reshape(M, D)
    qkv = mm(xm, sa_wqkv, sa_bqkv)                                # [M, 3D]
    q = (qkv[:, :D] * scale).reshape(bt, T, D).astype(jnp.bfloat16)
    k = qkv[:, D:2 * D].reshape(bt, T, D).astype(jnp.bfloat16)
    v = qkv[:, 2 * D:].reshape(bt, T, D).astype(jnp.bfloat16)
    sa = _mha(q, k, v, mask, nhead, dh)                           # [Bt, T, D]
    sa = mm(sa.reshape(M, D), sa_wo, sa_bo).reshape(bt, T, D)
    x = _add_ln(x, sa, ln1_g[...], ln1_b[...])

    # ---- cross-attention: fused KV projection of memory ---------------------
    q2 = (mm(x.reshape(M, D), ca_wq, ca_bq) * scale
          ).reshape(bt, T, D).astype(jnp.bfloat16)
    kv = mm(mem.reshape(MS, D), ca_wkv, ca_bkv)                   # [Bt*S, 2D]
    k2 = kv[:, :D].reshape(bt, S, D).astype(jnp.bfloat16)
    v2 = kv[:, D:].reshape(bt, S, D).astype(jnp.bfloat16)
    ca = _mha(q2, k2, v2, None, nhead, dh)
    ca = mm(ca.reshape(M, D), ca_wo, ca_bo).reshape(bt, T, D)
    x = _add_ln(x, ca, ln2_g[...], ln2_b[...])

    # ---- feed-forward (ReLU) -------------------------------------------------
    h1 = jnp.maximum(mm(x.reshape(M, D), w1, b1), 0.0)            # [M, F]
    ff = mm(h1, w2, b2).reshape(bt, T, D)
    x = _add_ln(x, ff, ln3_g[...], ln3_b[...])

    o_ref[...] = x.astype(o_ref.dtype)


def _pick_batch_tile(B, T, target_rows=256):
    # fold as many batch elements per grid step as needed to give the MXU a
    # usable M dimension (for very large B this still leaves >=2 parallel steps
    # so both v7x TensorCores get work)
    bt = max(1, min(B, target_rows // max(T, 1)))
    while B % bt:
        bt -= 1
    return bt


def _stack_vmem_limit(bt, T, S, D, F):
    w16 = 2 * (7 * D * D + 2 * D * F)                  # bf16 weights / layer
    w32 = 4 * (15 * D + F)                             # f32 biases + LN params
    acts = 4 * bt * (10 * T * D + 4 * S * D + 2 * T * T + 2 * T * S + 2 * T * F)
    need = 2 * (w16 + w32) + acts + (4 << 20)          # 2x for double buffering
    return int(min(max(need, 16 << 20), 48 << 20))


def decoder_stack(x, memory, causal, pad_add, stack, nhead):
    # x:[B,T,D]  memory:[B,S,D]  causal:[T,T]  pad_add:[B,1,T]
    B, T, D = x.shape
    S = memory.shape[1]
    L = stack['sa_wqkv'].shape[0]
    F = stack['w1'].shape[2]
    bt = _pick_batch_tile(B, T)

    def data(*dims):
        nd = len(dims)
        return pl.BlockSpec((bt,) + dims, lambda b, l, nd=nd: (b,) + (0,) * nd)

    def wspec(arr):   # stacked per-layer weight, streamed along the layer axis
        return pl.BlockSpec((None,) + tuple(arr.shape[1:]),
                            lambda b, l: (l, 0, 0))

    w_args = [stack[name] for name in _STACK_ORDER]
    in_specs = ([data(T, D),                                   # tgt (layer 0)
                 data(S, D),                                   # memory
                 pl.BlockSpec((T, T), lambda b, l: (0, 0)),    # causal mask
                 data(1, T)]                                   # key-padding row
                + [wspec(a) for a in w_args])

    return pl.pallas_call(
        functools.partial(_decoder_stack_kernel, nhead=nhead),
        out_shape=jax.ShapeDtypeStruct((B, T, D), jnp.float32),
        grid=(B // bt, L),
        in_specs=in_specs,
        out_specs=data(T, D),      # same block index over the layer axis ->
                                   # activations stay resident in VMEM
        compiler_params=pltpu.CompilerParams(
            dimension_semantics=("parallel", "arbitrary"),
            vmem_limit_bytes=_stack_vmem_limit(bt, T, S, D, F)),
    )(x, memory, causal, pad_add, *w_args)


# --------------------------- final vocab projection ---------------------------

def _dense_kernel(x_ref, w_ref, b_ref, o_ref):
    o_ref[...] = (jnp.dot(x_ref[...].astype(jnp.bfloat16), w_ref[...],
                          preferred_element_type=jnp.float32)
                  + b_ref[...]).astype(o_ref.dtype)


def _row_tile(m, target=512):
    if m <= target:
        return m
    for c in (512, 256, 128, 64, 32, 16, 8):
        if m % c == 0:
            return c
    return m


def _col_tile(v, target=1024):
    if v <= target:
        return v
    for c in (1024, 512, 256, 128):
        if v % c == 0:
            return c
    return v


def pallas_dense(x, w, b):
    # x:[M,D] f32, w:[D,V] bf16, b:[1,V] f32 -> [M,V] f32
    M, D = x.shape
    V = w.shape[1]
    bm = _row_tile(M)
    bn = _col_tile(V)
    return pl.pallas_call(
        _dense_kernel,
        out_shape=jax.ShapeDtypeStruct((M, V), jnp.float32),
        grid=(M // bm, V // bn),
        in_specs=[pl.BlockSpec((bm, D), lambda i, j: (i, 0)),
                  pl.BlockSpec((D, bn), lambda i, j: (0, j)),
                  pl.BlockSpec((1, bn), lambda i, j: (0, j))],
        out_specs=pl.BlockSpec((bm, bn), lambda i, j: (i, j)),
        compiler_params=pltpu.CompilerParams(
            dimension_semantics=("parallel", "parallel")),
    )(x, w, b)


# --------------------------- model glue (plain JAX) ---------------------------

def positional_encoding(max_len, d_model):
    position = jnp.arange(max_len, dtype=jnp.float32)[:, None]
    div_term = jnp.exp(jnp.arange(0, d_model, 2, dtype=jnp.float32)
                       * (-math.log(10000.0) / d_model))
    pe = jnp.zeros((max_len, d_model), dtype=jnp.float32)
    pe = pe.at[:, 0::2].set(jnp.sin(position * div_term))
    pe = pe.at[:, 1::2].set(jnp.cos(position * div_term))
    return pe


def transformer_decoder_forward(params, src_emb, tgt_tokens, tgt_mask,
                                tgt_padding_mask, *, nhead):
    # src_emb: NCHW [B, D, H, W]
    B, D, H, W = src_emb.shape
    S = H * W
    src = src_emb.reshape(B, D, S).transpose(0, 2, 1)              # [B, S, D]
    pe = params['pe']
    src = src + pe[:S][None]    # TODO(synk): nn.Dropout identity in eval mode

    T = tgt_tokens.shape[1]
    tgt = params['emb'][tgt_tokens] * math.sqrt(D)                 # [B, T, D]
    tgt = tgt + pe[:T][None]

    # masks: causal [T,T] (may contain -inf, clamped in-kernel) and an
    # additive key-padding row [B,1,T] — no [B*nhead,T,*] materialization.
    pad_add = jnp.where(tgt_padding_mask, NEG_BIG, 0.0
                        ).astype(jnp.float32).reshape(B, 1, T)
    causal = tgt_mask.astype(jnp.float32)

    x = decoder_stack(tgt, src, causal, pad_add, params['stack'], nhead)

    # seq-major BEFORE the dense (tiny tensor) so the much larger logits are
    # produced directly in the final [T, B, V] layout — no logits transpose.
    x_tb = x.transpose(1, 0, 2).reshape(T * B, D)
    logits = pallas_dense(x_tb, params['dense_w'], params['dense_b'])
    return logits.reshape(T, B, -1)                                # [T, B, V]


# --------------------------- deterministic init --------------------------------

def init_params(key, *, emb_size, nhead, num_layers, vocab, dim_ff,
                max_len=5000):
    D, F, V, L = emb_size, dim_ff, vocab, num_layers
    keys = jax.random.split(key, 2 + L)

    def u(k, shape, scale):
        return jax.random.uniform(k, shape, jnp.float32, -scale, scale)

    s = 1.0 / math.sqrt(D)
    per_layer = []
    for li in range(L):
        lk = jax.random.split(keys[2 + li], 7)
        per_layer.append({
            # self-attention: fused QKV projection
            'sa_wqkv': u(lk[0], (D, 3 * D), s),
            'sa_bqkv': jnp.zeros((1, 3 * D), jnp.float32),
            'sa_wo':   u(lk[1], (D, D), s),
            'sa_bo':   jnp.zeros((1, D), jnp.float32),
            'ln1_g':   jnp.ones((1, D), jnp.float32),
            'ln1_b':   jnp.zeros((1, D), jnp.float32),
            # cross-attention: Q projection + fused KV projection of memory
            'ca_wq':   u(lk[2], (D, D), s),
            'ca_bq':   jnp.zeros((1, D), jnp.float32),
            'ca_wkv':  u(lk[3], (D, 2 * D), s),
            'ca_bkv':  jnp.zeros((1, 2 * D), jnp.float32),
            'ca_wo':   u(lk[4], (D, D), s),
            'ca_bo':   jnp.zeros((1, D), jnp.float32),
            'ln2_g':   jnp.ones((1, D), jnp.float32),
            'ln2_b':   jnp.zeros((1, D), jnp.float32),
            # feed-forward
            'w1':      u(lk[5], (D, F), s),
            'b1':      jnp.zeros((1, F), jnp.float32),
            'w2':      u(lk[6], (F, D), 1.0 / math.sqrt(F)),
            'b2':      jnp.zeros((1, D), jnp.float32),
            'ln3_g':   jnp.ones((1, D), jnp.float32),
            'ln3_b':   jnp.zeros((1, D), jnp.float32),
        })
    # stack per-layer weights along a leading layer axis (streamed in-kernel)
    stack = {name: jnp.stack([lp[name] for lp in per_layer])
             for name in per_layer[0]}
    for name in _BF16_WEIGHTS:                       # MXU-native bf16 weights
        stack[name] = stack[name].astype(jnp.bfloat16)

    return {
        'emb': u(keys[0], (V, D), 0.1),              # embedding.weight U(-.1,.1)
        'dense_w': u(keys[1], (D, V), 0.1).astype(jnp.bfloat16),
        'dense_b': jnp.zeros((1, V), jnp.float32),
        'pe': positional_encoding(max_len, D),
        'stack': stack,
    }


# --------------------------------- main -----------------------------------------

if __name__ == "__main__":
    emb_size, nhead, num_layers = 32, 4, 2
    tgt_vocab_size, dim_feedforward = 64, 64
    B, H, W, T = 2, 4, 4, 8

    key = jax.random.PRNGKey(0)
    k_p, k_src, k_tok = jax.random.split(key, 3)

    params = init_params(k_p, emb_size=emb_size, nhead=nhead,
                         num_layers=num_layers, vocab=tgt_vocab_size,
                         dim_ff=dim_feedforward)

    src_emb = jax.random.normal(k_src, (B, emb_size, H, W), jnp.float32)
    tgt_tokens = jax.random.randint(k_tok, (B, T), 0, tgt_vocab_size)
    # causal additive mask [T, T]: -inf strictly above the diagonal
    idx = jnp.arange(T)
    tgt_mask = jnp.where(idx[None, :] > idx[:, None], -jnp.inf, 0.0
                         ).astype(jnp.float32)
    # key-padding mask [B, T]: True == pad; pad the last 2 tokens of batch 1
    tgt_padding_mask = jnp.zeros((B, T), dtype=bool).at[1, -2:].set(True)

    fwd = jax.jit(functools.partial(transformer_decoder_forward, nhead=nhead))
    out = fwd(params, src_emb, tgt_tokens, tgt_mask, tgt_padding_mask)
    out = jax.block_until_ready(out)

    assert out.shape == (T, B, tgt_vocab_size), out.shape
    assert bool(jnp.all(jnp.isfinite(out)))
    print("KERNEL_OK")
</pallas_src>

<mosaic_0001>
module attributes {stable_mosaic.version = 11 : i64} {
  func.func @_dense_kernel(%arg0: i32, %arg1: i32, %arg2: memref<16x32xf32, #tpu.memory_space<vmem>>, %arg3: memref<32x64xbf16, #tpu.memory_space<vmem>>, %arg4: memref<1x64xf32, #tpu.memory_space<vmem>>, %arg5: memref<16x64xf32, #tpu.memory_space<vmem>>) attributes {dimension_semantics = [#tpu.dimension_semantics<parallel>, #tpu.dimension_semantics<parallel>], iteration_bounds = array<i64: 1, 1>, scalar_prefetch = 0 : i64, scratch_operands = 0 : i64, tpu.core_type = #tpu.core_type<tc>, window_params = [{transform_indices = @transform_0, window_bounds = array<i64: 16, 32>}, {transform_indices = @transform_1, window_bounds = array<i64: 32, 64>}, {transform_indices = @transform_2, window_bounds = array<i64: 1, 64>}, {transform_indices = @transform_3, window_bounds = array<i64: 16, 64>}]} {
    %c0 = arith.constant 0 : index
    %c0_0 = arith.constant 0 : index
    %0 = vector.load %arg2[%c0, %c0_0] : memref<16x32xf32, #tpu.memory_space<vmem>>, vector<16x32xf32>
    %1 = arith.truncf %0 : vector<16x32xf32> to vector<16x32xbf16>
    %c0_1 = arith.constant 0 : index
    %c0_2 = arith.constant 0 : index
    %2 = vector.load %arg3[%c0_1, %c0_2] : memref<32x64xbf16, #tpu.memory_space<vmem>>, vector<32x64xbf16>
    %cst = arith.constant dense<0.000000e+00> : vector<16x64xf32>
    %3 = tpu.matmul %1, %2, %cst {dimension_numbers = #tpu.dot_dimension_numbers<[1], [0], [0], [1], [0, 0, 1, 1], [], []>} : vector<16x32xbf16>, vector<32x64xbf16>, vector<16x64xf32> -> vector<16x64xf32>
    %c0_3 = arith.constant 0 : index
    %c0_4 = arith.constant 0 : index
    %4 = vector.load %arg4[%c0_3, %c0_4] : memref<1x64xf32, #tpu.memory_space<vmem>>, vector<1x64xf32>
    %5 = vector.broadcast %4 : vector<1x64xf32> to vector<16x64xf32>
    %6 = arith.addf %3, %5 : vector<16x64xf32>
    %c0_5 = arith.constant 0 : index
    %c0_6 = arith.constant 0 : index
    %7 = vector.load %arg5[%c0_5, %c0_6] : memref<16x64xf32, #tpu.memory_space<vmem>>, vector<16x64xf32>
    tpu.vector_store %arg5[%c0_5, %c0_6], %6 {strides = array<i32>} : memref<16x64xf32, #tpu.memory_space<vmem>>, vector<16x64xf32>,
    return
  }
  func.func @transform_0(%arg0: i32, %arg1: i32) -> (i32, i32) {
    %c0_i32 = arith.constant 0 : i32
    %c0_i32_0 = arith.constant 0 : i32
    return %arg0, %c0_i32 : i32, i32
  }
  func.func @transform_1(%arg0: i32, %arg1: i32) -> (i32, i32) {
    %c0_i32 = arith.constant 0 : i32
    %c0_i32_0 = arith.constant 0 : i32
    return %c0_i32, %arg1 : i32, i32
  }
  func.func @transform_2(%arg0: i32, %arg1: i32) -> (i32, i32) {
    %c0_i32 = arith.constant 0 : i32
    %c0_i32_0 = arith.constant 0 : i32
    return %c0_i32, %arg1 : i32, i32
  }
  func.func @transform_3(%arg0: i32, %arg1: i32) -> (i32, i32) {
    %c0_i32 = arith.constant 0 : i32
    return %arg0, %arg1 : i32, i32
  }
}

module attributes {stable_mosaic.version = 11 : i64} {
  func.func @_decoder_stack_kernel(%arg0: i32, %arg1: i32, %arg2: memref<2x8x32xf32, #tpu.memory_space<vmem>>, %arg3: memref<2x16x32xf32, #tpu.memory_space<vmem>>, %arg4: memref<8x8xf32, #tpu.memory_space<vmem>>, %arg5: memref<2x1x8xf32, #tpu.memory_space<vmem>>, %arg6: memref<1x32x96xbf16, #tpu.memory_space<vmem>>, %arg7: memref<1x1x96xf32, #tpu.memory_space<vmem>>, %arg8: memref<1x32x32xbf16, #tpu.memory_space<vmem>>, %arg9: memref<1x1x32xf32, #tpu.memory_space<vmem>>, %arg10: memref<1x1x32xf32, #tpu.memory_space<vmem>>, %arg11: memref<1x1x32xf32, #tpu.memory_space<vmem>>, %arg12: memref<1x32x32xbf16, #tpu.memory_space<vmem>>, %arg13: memref<1x1x32xf32, #tpu.memory_space<vmem>>, %arg14: memref<1x32x64xbf16, #tpu.memory_space<vmem>>, %arg15: memref<1x1x64xf32, #tpu.memory_space<vmem>>, %arg16: memref<1x32x32xbf16, #tpu.memory_space<vmem>>, %arg17: memref<1x1x32xf32, #tpu.memory_space<vmem>>, %arg18: memref<1x1x32xf32, #tpu.memory_space<vmem>>, %arg19: memref<1x1x32xf32, #tpu.memory_space<vmem>>, %arg20: memref<1x32x64xbf16, #tpu.memory_space<vmem>>, %arg21: memref<1x1x64xf32, #tpu.memory_space<vmem>>, %arg22: memref<1x64x32xbf16, #tpu.memory_space<vmem>>, %arg23: memref<1x1x32xf32, #tpu.memory_space<vmem>>, %arg24: memref<1x1x32xf32, #tpu.memory_space<vmem>>, %arg25: memref<1x1x32xf32, #tpu.memory_space<vmem>>, %arg26: memref<2x8x32xf32, #tpu.memory_space<vmem>>) attributes {dimension_semantics = [#tpu.dimension_semantics<parallel>, #tpu.dimension_semantics<arbitrary>], iteration_bounds = array<i64: 1, 2>, scalar_prefetch = 0 : i64, scratch_operands = 0 : i64, tpu.core_type = #tpu.core_type<tc>, window_params = [{transform_indices = @transform_0, window_bounds = array<i64: 2, 8, 32>}, {transform_indices = @transform_1, window_bounds = array<i64: 2, 16, 32>}, {pipeline_mode = #tpu.pipeline_mode<synchronous>, transform_indices = @transform_2, window_bounds = array<i64: 8, 8>}, {transform_indices = @transform_3, window_bounds = array<i64: 2, 1, 8>}, {transform_indices = @transform_4, window_bounds = array<i64: 1, 32, 96>}, {transform_indices = @transform_5, window_bounds = array<i64: 1, 1, 96>}, {transform_indices = @transform_6, window_bounds = array<i64: 1, 32, 32>}, {transform_indices = @transform_7, window_bounds = array<i64: 1, 1, 32>}, {transform_indices = @transform_8, window_bounds = array<i64: 1, 1, 32>}, {transform_indices = @transform_9, window_bounds = array<i64: 1, 1, 32>}, {transform_indices = @transform_10, window_bounds = array<i64: 1, 32, 32>}, {transform_indices = @transform_11, window_bounds = array<i64: 1, 1, 32>}, {transform_indices = @transform_12, window_bounds = array<i64: 1, 32, 64>}, {transform_indices = @transform_13, window_bounds = array<i64: 1, 1, 64>}, {transform_indices = @transform_14, window_bounds = array<i64: 1, 32, 32>}, {transform_indices = @transform_15, window_bounds = array<i64: 1, 1, 32>}, {transform_indices = @transform_16, window_bounds = array<i64: 1, 1, 32>}, {transform_indices = @transform_17, window_bounds = array<i64: 1, 1, 32>}, {transform_indices = @transform_18, window_bounds = array<i64: 1, 32, 64>}, {transform_indices = @transform_19, window_bounds = array<i64: 1, 1, 64>}, {transform_indices = @transform_20, window_bounds = array<i64: 1, 64, 32>}, {transform_indices = @transform_21, window_bounds = array<i64: 1, 1, 32>}, {transform_indices = @transform_22, window_bounds = array<i64: 1, 1, 32>}, {transform_indices = @transform_23, window_bounds = array<i64: 1, 1, 32>}, {transform_indices = @transform_24, window_bounds = array<i64: 2, 8, 32>}]} {
    %c0_i32 = arith.constant 0 : i32
    %0 = arith.cmpi eq, %arg1, %c0_i32 : i32
    %1 = arith.extui %0 : i1 to i32
    %c0_i32_0 = arith.constant 0 : i32
    %2 = arith.cmpi ne, %1, %c0_i32_0 : i32
    scf.if %2 {
      %c0_131 = arith.constant 0 : index
      %c0_132 = arith.constant 0 : index
      %c0_133 = arith.constant 0 : index
      %317 = vector.load %arg2[%c0_131, %c0_132, %c0_133] : memref<2x8x32xf32, #tpu.memory_space<vmem>>, vector<2x8x32xf32>
      %c0_134 = arith.constant 0 : index
      %c0_135 = arith.constant 0 : index
      %c0_136 = arith.constant 0 : index
      %318 = vector.load %arg26[%c0_134, %c0_135, %c0_136] : memref<2x8x32xf32, #tpu.memory_space<vmem>>, vector<2x8x32xf32>
      tpu.vector_store %arg26[%c0_134, %c0_135, %c0_136], %317 {strides = array<i32>} : memref<2x8x32xf32, #tpu.memory_space<vmem>>, vector<2x8x32xf32>,
    } else {
    }
    %c0 = arith.constant 0 : index
    %c0_1 = arith.constant 0 : index
    %c0_2 = arith.constant 0 : index
    %3 = vector.load %arg26[%c0, %c0_1, %c0_2] : memref<2x8x32xf32, #tpu.memory_space<vmem>>, vector<2x8x32xf32>
    %c0_3 = arith.constant 0 : index
    %c0_4 = arith.constant 0 : index
    %c0_5 = arith.constant 0 : index
    %4 = vector.load %arg3[%c0_3, %c0_4, %c0_5] : memref<2x16x32xf32, #tpu.memory_space<vmem>>, vector<2x16x32xf32>
    %c0_6 = arith.constant 0 : index
    %c0_7 = arith.constant 0 : index
    %5 = vector.load %arg4[%c0_6, %c0_7] : memref<8x8xf32, #tpu.memory_space<vmem>>, vector<8x8xf32>
    %6 = vector.shape_cast %5 : vector<8x8xf32> to vector<1x8x8xf32>
    %c0_8 = arith.constant 0 : index
    %c0_9 = arith.constant 0 : index
    %c0_10 = arith.constant 0 : index
    %7 = vector.load %arg5[%c0_8, %c0_9, %c0_10] : memref<2x1x8xf32, #tpu.memory_space<vmem>>, vector<2x1x8xf32>
    %8 = vector.broadcast %6 : vector<1x8x8xf32> to vector<2x8x8xf32>
    %9 = vector.broadcast %7 : vector<2x1x8xf32> to vector<2x8x8xf32>
    %10 = arith.addf %8, %9 : vector<2x8x8xf32>
    %cst = arith.constant -1.000000e+30 : f32
    %11 = vector.broadcast %cst : f32 to vector<2x8x8xf32>
    %12 = arith.maximumf %10, %11 : vector<2x8x8xf32>
    %13 = vector.shape_cast %3 : vector<2x8x32xf32> to vector<16x32xf32>
    %14 = arith.truncf %13 : vector<16x32xf32> to vector<16x32xbf16>
    %c0_11 = arith.constant 0 : index
    %c0_12 = arith.constant 0 : index
    %c0_13 = arith.constant 0 : index
    %15 = vector.load %arg6[%c0_11, %c0_12, %c0_13] : memref<1x32x96xbf16, #tpu.memory_space<vmem>>, vector<1x32x96xbf16>
    %16 = vector.shape_cast %15 : vector<1x32x96xbf16> to vector<32x96xbf16>
    %cst_14 = arith.constant dense<0.000000e+00> : vector<16x96xf32>
    %17 = tpu.matmul %14, %16, %cst_14 {dimension_numbers = #tpu.dot_dimension_numbers<[1], [0], [0], [1], [0, 0, 1, 1], [], []>} : vector<16x32xbf16>, vector<32x96xbf16>, vector<16x96xf32> -> vector<16x96xf32>
    %c0_15 = arith.constant 0 : index
    %c0_16 = arith.constant 0 : index
    %c0_17 = arith.constant 0 : index
    %18 = vector.load %arg7[%c0_15, %c0_16, %c0_17] : memref<1x1x96xf32, #tpu.memory_space<vmem>>, vector<1x1x96xf32>
    %19 = vector.shape_cast %18 : vector<1x1x96xf32> to vector<1x96xf32>
    %20 = vector.broadcast %19 : vector<1x96xf32> to vector<16x96xf32>
    %21 = arith.addf %17, %20 : vector<16x96xf32>
    %22 = vector.extract_strided_slice %21 {offsets = [0, 0], sizes = [16, 32], strides = [1, 1]} : vector<16x96xf32> to vector<16x32xf32>
    %cst_18 = arith.constant 0.353553385 : f32
    %23 = vector.broadcast %cst_18 : f32 to vector<16x32xf32>
    %24 = arith.mulf %22, %23 : vector<16x32xf32>
    %25 = vector.shape_cast %24 : vector<16x32xf32> to vector<2x8x32xf32>
    %26 = arith.truncf %25 : vector<2x8x32xf32> to vector<2x8x32xbf16>
    %27 = vector.extract_strided_slice %21 {offsets = [0, 32], sizes = [16, 32], strides = [1, 1]} : vector<16x96xf32> to vector<16x32xf32>
    %28 = vector.shape_cast %27 : vector<16x32xf32> to vector<2x8x32xf32>
    %29 = arith.truncf %28 : vector<2x8x32xf32> to vector<2x8x32xbf16>
    %30 = vector.extract_strided_slice %21 {offsets = [0, 64], sizes = [16, 32], strides = [1, 1]} : vector<16x96xf32> to vector<16x32xf32>
    %31 = vector.shape_cast %30 : vector<16x32xf32> to vector<2x8x32xf32>
    %32 = arith.truncf %31 : vector<2x8x32xf32> to vector<2x8x32xbf16>
    %33 = vector.extract_strided_slice %26 {offsets = [0, 0, 0], sizes = [2, 8, 8], strides = [1, 1, 1]} : vector<2x8x32xbf16> to vector<2x8x8xbf16>
    %34 = vector.extract_strided_slice %29 {offsets = [0, 0, 0], sizes = [2, 8, 8], strides = [1, 1, 1]} : vector<2x8x32xbf16> to vector<2x8x8xbf16>
    "tpu.trace_start"() <{level = 10 : i32, message = "btd,bsd->bts"}> : () -> ()
    %cst_19 = arith.constant dense<0.000000e+00> : vector<2x8x8xf32>
    %35 = tpu.matmul %33, %34, %cst_19 {dimension_numbers = #tpu.dot_dimension_numbers<[2], [2], [1], [1], [0, 0, 0, 1, 1, 1], [0], [0]>} : vector<2x8x8xbf16>, vector<2x8x8xbf16>, vector<2x8x8xf32> -> vector<2x8x8xf32>
    "tpu.trace_stop"() : () -> ()
    %36 = arith.addf %35, %12 : vector<2x8x8xf32>
    %cst_20 = arith.constant dense<0xFF800000> : vector<2x8xf32>
    %37 = vector.multi_reduction <maximumf>, %36, %cst_20 [2] : vector<2x8x8xf32> to vector<2x8xf32>
    %38 = vector.shape_cast %37 : vector<2x8xf32> to vector<2x8x1xf32>
    %39 = vector.broadcast %38 : vector<2x8x1xf32> to vector<2x8x8xf32>
    %40 = arith.subf %36, %39 : vector<2x8x8xf32>
    %41 = math.exp %40 : vector<2x8x8xf32>
    %cst_21 = arith.constant dense<0.000000e+00> : vector<2x8xf32>
    %42 = vector.multi_reduction <add>, %41, %cst_21 [2] : vector<2x8x8xf32> to vector<2x8xf32>
    %43 = vector.shape_cast %42 : vector<2x8xf32> to vector<2x8x1xf32>
    %44 = tpu.reciprocal %43 {approx = true} : vector<2x8x1xf32> -> vector<2x8x1xf32>
    %45 = vector.broadcast %44 : vector<2x8x1xf32> to vector<2x8x8xf32>
    %46 = arith.mulf %41, %45 : vector<2x8x8xf32>
    %47 = arith.truncf %46 : vector<2x8x8xf32> to vector<2x8x8xbf16>
    %48 = vector.extract_strided_slice %32 {offsets = [0, 0, 0], sizes = [2, 8, 8], strides = [1, 1, 1]} : vector<2x8x32xbf16> to vector<2x8x8xbf16>
    "tpu.trace_start"() <{level = 10 : i32, message = "bts,bsd->btd"}> : () -> ()
    %cst_22 = arith.constant dense<0.000000e+00> : vector<2x8x8xf32>
    %49 = tpu.matmul %47, %48, %cst_22 {dimension_numbers = #tpu.dot_dimension_numbers<[2], [1], [1], [2], [0, 0, 0, 1, 1, 2], [0], [0]>} : vector<2x8x8xbf16>, vector<2x8x8xbf16>, vector<2x8x8xf32> -> vector<2x8x8xf32>
    "tpu.trace_stop"() : () -> ()
    %50 = vector.extract_strided_slice %26 {offsets = [0, 0, 8], sizes = [2, 8, 8], strides = [1, 1, 1]} : vector<2x8x32xbf16> to vector<2x8x8xbf16>
    %51 = vector.extract_strided_slice %29 {offsets = [0, 0, 8], sizes = [2, 8, 8], strides = [1, 1, 1]} : vector<2x8x32xbf16> to vector<2x8x8xbf16>
    "tpu.trace_start"() <{level = 10 : i32, message = "btd,bsd->bts"}> : () -> ()
    %cst_23 = arith.constant dense<0.000000e+00> : vector<2x8x8xf32>
    %52 = tpu.matmul %50, %51, %cst_23 {dimension_numbers = #tpu.dot_dimension_numbers<[2], [2], [1], [1], [0, 0, 0, 1, 1, 1], [0], [0]>} : vector<2x8x8xbf16>, vector<2x8x8xbf16>, vector<2x8x8xf32> -> vector<2x8x8xf32>
    "tpu.trace_stop"() : () -> ()
    %53 = arith.addf %52, %12 : vector<2x8x8xf32>
    %cst_24 = arith.constant dense<0xFF800000> : vector<2x8xf32>
    %54 = vector.multi_reduction <maximumf>, %53, %cst_24 [2] : vector<2x8x8xf32> to vector<2x8xf32>
    %55 = vector.shape_cast %54 : vector<2x8xf32> to vector<2x8x1xf32>
    %56 = vector.broadcast %55 : vector<2x8x1xf32> to vector<2x8x8xf32>
    %57 = arith.subf %53, %56 : vector<2x8x8xf32>
    %58 = math.exp %57 : vector<2x8x8xf32>
    %cst_25 = arith.constant dense<0.000000e+00> : vector<2x8xf32>
    %59 = vector.multi_reduction <add>, %58, %cst_25 [2] : vector<2x8x8xf32> to vector<2x8xf32>
    %60 = vector.shape_cast %59 : vector<2x8xf32> to vector<2x8x1xf32>
    %61 = tpu.reciprocal %60 {approx = true} : vector<2x8x1xf32> -> vector<2x8x1xf32>
    %62 = vector.broadcast %61 : vector<2x8x1xf32> to vector<2x8x8xf32>
    %63 = arith.mulf %58, %62 : vector<2x8x8xf32>
    %64 = arith.truncf %63 : vector<2x8x8xf32> to vector<2x8x8xbf16>
    %65 = vector.extract_strided_slice %32 {offsets = [0, 0, 8], sizes = [2, 8, 8], strides = [1, 1, 1]} : vector<2x8x32xbf16> to vector<2x8x8xbf16>
    "tpu.trace_start"() <{level = 10 : i32, message = "bts,bsd->btd"}> : () -> ()
    %cst_26 = arith.constant dense<0.000000e+00> : vector<2x8x8xf32>
    %66 = tpu.matmul %64, %65, %cst_26 {dimension_numbers = #tpu.dot_dimension_numbers<[2], [1], [1], [2], [0, 0, 0, 1, 1, 2], [0], [0]>} : vector<2x8x8xbf16>, vector<2x8x8xbf16>, vector<2x8x8xf32> -> vector<2x8x8xf32>
    "tpu.trace_stop"() : () -> ()
    %67 = vector.extract_strided_slice %26 {offsets = [0, 0, 16], sizes = [2, 8, 8], strides = [1, 1, 1]} : vector<2x8x32xbf16> to vector<2x8x8xbf16>
    %68 = vector.extract_strided_slice %29 {offsets = [0, 0, 16], sizes = [2, 8, 8], strides = [1, 1, 1]} : vector<2x8x32xbf16> to vector<2x8x8xbf16>
    "tpu.trace_start"() <{level = 10 : i32, message = "btd,bsd->bts"}> : () -> ()
    %cst_27 = arith.constant dense<0.000000e+00> : vector<2x8x8xf32>
    %69 = tpu.matmul %67, %68, %cst_27 {dimension_numbers = #tpu.dot_dimension_numbers<[2], [2], [1], [1], [0, 0, 0, 1, 1, 1], [0], [0]>} : vector<2x8x8xbf16>, vector<2x8x8xbf16>, vector<2x8x8xf32> -> vector<2x8x8xf32>
    "tpu.trace_stop"() : () -> ()
    %70 = arith.addf %69, %12 : vector<2x8x8xf32>
    %cst_28 = arith.constant dense<0xFF800000> : vector<2x8xf32>
    %71 = vector.multi_reduction <maximumf>, %70, %cst_28 [2] : vector<2x8x8xf32> to vector<2x8xf32>
    %72 = vector.shape_cast %71 : vector<2x8xf32> to vector<2x8x1xf32>
    %73 = vector.broadcast %72 : vector<2x8x1xf32> to vector<2x8x8xf32>
    %74 = arith.subf %70, %73 : vector<2x8x8xf32>
    %75 = math.exp %74 : vector<2x8x8xf32>
    %cst_29 = arith.constant dense<0.000000e+00> : vector<2x8xf32>
    %76 = vector.multi_reduction <add>, %75, %cst_29 [2] : vector<2x8x8xf32> to vector<2x8xf32>
    %77 = vector.shape_cast %76 : vector<2x8xf32> to vector<2x8x1xf32>
    %78 = tpu.reciprocal %77 {approx = true} : vector<2x8x1xf32> -> vector<2x8x1xf32>
    %79 = vector.broadcast %78 : vector<2x8x1xf32> to vector<2x8x8xf32>
    %80 = arith.mulf %75, %79 : vector<2x8x8xf32>
    %81 = arith.truncf %80 : vector<2x8x8xf32> to vector<2x8x8xbf16>
    %82 = vector.extract_strided_slice %32 {offsets = [0, 0, 16], sizes = [2, 8, 8], strides = [1, 1, 1]} : vector<2x8x32xbf16> to vector<2x8x8xbf16>
    "tpu.trace_start"() <{level = 10 : i32, message = "bts,bsd->btd"}> : () -> ()
    %cst_30 = arith.constant dense<0.000000e+00> : vector<2x8x8xf32>
    %83 = tpu.matmul %81, %82, %cst_30 {dimension_numbers = #tpu.dot_dimension_numbers<[2], [1], [1], [2], [0, 0, 0, 1, 1, 2], [0], [0]>} : vector<2x8x8xbf16>, vector<2x8x8xbf16>, vector<2x8x8xf32> -> vector<2x8x8xf32>
    "tpu.trace_stop"() : () -> ()
    %84 = vector.extract_strided_slice %26 {offsets = [0, 0, 24], sizes = [2, 8, 8], strides = [1, 1, 1]} : vector<2x8x32xbf16> to vector<2x8x8xbf16>
    %85 = vector.extract_strided_slice %29 {offsets = [0, 0, 24], sizes = [2, 8, 8], strides = [1, 1, 1]} : vector<2x8x32xbf16> to vector<2x8x8xbf16>
    "tpu.trace_start"() <{level = 10 : i32, message = "btd,bsd->bts"}> : () -> ()
    %cst_31 = arith.constant dense<0.000000e+00> : vector<2x8x8xf32>
    %86 = tpu.matmul %84, %85, %cst_31 {dimension_numbers = #tpu.dot_dimension_numbers<[2], [2], [1], [1], [0, 0, 0, 1, 1, 1], [0], [0]>} : vector<2x8x8xbf16>, vector<2x8x8xbf16>, vector<2x8x8xf32> -> vector<2x8x8xf32>
    "tpu.trace_stop"() : () -> ()
    %87 = arith.addf %86, %12 : vector<2x8x8xf32>
    %cst_32 = arith.constant dense<0xFF800000> : vector<2x8xf32>
    %88 = vector.multi_reduction <maximumf>, %87, %cst_32 [2] : vector<2x8x8xf32> to vector<2x8xf32>
    %89 = vector.shape_cast %88 : vector<2x8xf32> to vector<2x8x1xf32>
    %90 = vector.broadcast %89 : vector<2x8x1xf32> to vector<2x8x8xf32>
    %91 = arith.subf %87, %90 : vector<2x8x8xf32>
    %92 = math.exp %91 : vector<2x8x8xf32>
    %cst_33 = arith.constant dense<0.000000e+00> : vector<2x8xf32>
    %93 = vector.multi_reduction <add>, %92, %cst_33 [2] : vector<2x8x8xf32> to vector<2x8xf32>
    %94 = vector.shape_cast %93 : vector<2x8xf32> to vector<2x8x1xf32>
    %95 = tpu.reciprocal %94 {approx = true} : vector<2x8x1xf32> -> vector<2x8x1xf32>
    %96 = vector.broadcast %95 : vector<2x8x1xf32> to vector<2x8x8xf32>
    %97 = arith.mulf %92, %96 : vector<2x8x8xf32>
    %98 = arith.truncf %97 : vector<2x8x8xf32> to vector<2x8x8xbf16>
    %99 = vector.extract_strided_slice %32 {offsets = [0, 0, 24], sizes = [2, 8, 8], strides = [1, 1, 1]} : vector<2x8x32xbf16> to vector<2x8x8xbf16>
    "tpu.trace_start"() <{level = 10 : i32, message = "bts,bsd->btd"}> : () -> ()
    %cst_34 = arith.constant dense<0.000000e+00> : vector<2x8x8xf32>
    %100 = tpu.matmul %98, %99, %cst_34 {dimension_numbers = #tpu.dot_dimension_numbers<[2], [1], [1], [2], [0, 0, 0, 1, 1, 2], [0], [0]>} : vector<2x8x8xbf16>, vector<2x8x8xbf16>, vector<2x8x8xf32> -> vector<2x8x8xf32>
    "tpu.trace_stop"() : () -> ()
    %101 = tpu.concatenate %49, %66, %83, %100 in 2 : vector<2x8x8xf32>, vector<2x8x8xf32>, vector<2x8x8xf32>, vector<2x8x8xf32> -> vector<2x8x32xf32>
    %102 = vector.shape_cast %101 : vector<2x8x32xf32> to vector<16x32xf32>
    %103 = arith.truncf %102 : vector<16x32xf32> to vector<16x32xbf16>
    %c0_35 = arith.constant 0 : index
    %c0_36 = arith.constant 0 : index
    %c0_37 = arith.constant 0 : index
    %104 = vector.load %arg8[%c0_35, %c0_36, %c0_37] : memref<1x32x32xbf16, #tpu.memory_space<vmem>>, vector<1x32x32xbf16>
    %105 = vector.shape_cast %104 : vector<1x32x32xbf16> to vector<32x32xbf16>
    %cst_38 = arith.constant dense<0.000000e+00> : vector<16x32xf32>
    %106 = tpu.matmul %103, %105, %cst_38 {dimension_numbers = #tpu.dot_dimension_numbers<[1], [0], [0], [1], [0, 0, 1, 1], [], []>} : vector<16x32xbf16>, vector<32x32xbf16>, vector<16x32xf32> -> vector<16x32xf32>
    %c0_39 = arith.constant 0 : index
    %c0_40 = arith.constant 0 : index
    %c0_41 = arith.constant 0 : index
    %107 = vector.load %arg9[%c0_39, %c0_40, %c0_41] : memref<1x1x32xf32, #tpu.memory_space<vmem>>, vector<1x1x32xf32>
    %108 = vector.shape_cast %107 : vector<1x1x32xf32> to vector<1x32xf32>
    %109 = vector.broadcast %108 : vector<1x32xf32> to vector<16x32xf32>
    %110 = arith.addf %106, %109 : vector<16x32xf32>
    %111 = vector.shape_cast %110 : vector<16x32xf32> to vector<2x8x32xf32>
    %c0_42 = arith.constant 0 : index
    %c0_43 = arith.constant 0 : index
    %c0_44 = arith.constant 0 : index
    %112 = vector.load %arg10[%c0_42, %c0_43, %c0_44] : memref<1x1x32xf32, #tpu.memory_space<vmem>>, vector<1x1x32xf32>
    %113 = vector.shape_cast %112 : vector<1x1x32xf32> to vector<1x32xf32>
    %c0_45 = arith.constant 0 : index
    %c0_46 = arith.constant 0 : index
    %c0_47 = arith.constant 0 : index
    %114 = vector.load %arg11[%c0_45, %c0_46, %c0_47] : memref<1x1x32xf32, #tpu.memory_space<vmem>>, vector<1x1x32xf32>
    %115 = vector.shape_cast %114 : vector<1x1x32xf32> to vector<1x32xf32>
    %116 = arith.addf %3, %111 : vector<2x8x32xf32>
    %cst_48 = arith.constant dense<0.000000e+00> : vector<2x8xf32>
    %117 = vector.multi_reduction <add>, %116, %cst_48 [2] : vector<2x8x32xf32> to vector<2x8xf32>
    %118 = vector.shape_cast %117 : vector<2x8xf32> to vector<2x8x1xf32>
    %cst_49 = arith.constant 3.200000e+01 : f32
    %119 = vector.broadcast %cst_49 : f32 to vector<2x8x1xf32>
    %120 = arith.divf %118, %119 : vector<2x8x1xf32>
    %121 = vector.broadcast %120 : vector<2x8x1xf32> to vector<2x8x32xf32>
    %122 = arith.subf %116, %121 : vector<2x8x32xf32>
    %123 = arith.mulf %122, %122 : vector<2x8x32xf32>
    %cst_50 = arith.constant dense<0.000000e+00> : vector<2x8xf32>
    %124 = vector.multi_reduction <add>, %123, %cst_50 [2] : vector<2x8x32xf32> to vector<2x8xf32>
    %125 = vector.shape_cast %124 : vector<2x8xf32> to vector<2x8x1xf32>
    %cst_51 = arith.constant 3.200000e+01 : f32
    %126 = vector.broadcast %cst_51 : f32 to vector<2x8x1xf32>
    %127 = arith.divf %125, %126 : vector<2x8x1xf32>
    %cst_52 = arith.constant 9.99999974E-6 : f32
    %128 = vector.broadcast %cst_52 : f32 to vector<2x8x1xf32>
    %129 = arith.addf %127, %128 : vector<2x8x1xf32>
    %130 = math.rsqrt %129 : vector<2x8x1xf32>
    %131 = vector.broadcast %130 : vector<2x8x1xf32> to vector<2x8x32xf32>
    %132 = arith.mulf %122, %131 : vector<2x8x32xf32>
    %133 = vector.shape_cast %113 : vector<1x32xf32> to vector<1x1x32xf32>
    %134 = vector.broadcast %133 : vector<1x1x32xf32> to vector<2x8x32xf32>
    %135 = arith.mulf %132, %134 : vector<2x8x32xf32>
    %136 = vector.shape_cast %115 : vector<1x32xf32> to vector<1x1x32xf32>
    %137 = vector.broadcast %136 : vector<1x1x32xf32> to vector<2x8x32xf32>
    %138 = arith.addf %135, %137 : vector<2x8x32xf32>
    %139 = vector.shape_cast %138 : vector<2x8x32xf32> to vector<16x32xf32>
    %140 = arith.truncf %139 : vector<16x32xf32> to vector<16x32xbf16>
    %c0_53 = arith.constant 0 : index
    %c0_54 = arith.constant 0 : index
    %c0_55 = arith.constant 0 : index
    %141 = vector.load %arg12[%c0_53, %c0_54, %c0_55] : memref<1x32x32xbf16, #tpu.memory_space<vmem>>, vector<1x32x32xbf16>
    %142 = vector.shape_cast %141 : vector<1x32x32xbf16> to vector<32x32xbf16>
    %cst_56 = arith.constant dense<0.000000e+00> : vector<16x32xf32>
    %143 = tpu.matmul %140, %142, %cst_56 {dimension_numbers = #tpu.dot_dimension_numbers<[1], [0], [0], [1], [0, 0, 1, 1], [], []>} : vector<16x32xbf16>, vector<32x32xbf16>, vector<16x32xf32> -> vector<16x32xf32>
    %c0_57 = arith.constant 0 : index
    %c0_58 = arith.constant 0 : index
    %c0_59 = arith.constant 0 : index
    %144 = vector.load %arg13[%c0_57, %c0_58, %c0_59] : memref<1x1x32xf32, #tpu.memory_space<vmem>>, vector<1x1x32xf32>
    %145 = vector.shape_cast %144 : vector<1x1x32xf32> to vector<1x32xf32>
    %146 = vector.broadcast %145 : vector<1x32xf32> to vector<16x32xf32>
    %147 = arith.addf %143, %146 : vector<16x32xf32>
    %cst_60 = arith.constant 0.353553385 : f32
    %148 = vector.broadcast %cst_60 : f32 to vector<16x32xf32>
    %149 = arith.mulf %147, %148 : vector<16x32xf32>
    %150 = vector.shape_cast %149 : vector<16x32xf32> to vector<2x8x32xf32>
    %151 = arith.truncf %150 : vector<2x8x32xf32> to vector<2x8x32xbf16>
    %152 = vector.shape_cast %4 : vector<2x16x32xf32> to vector<32x32xf32>
    %153 = arith.truncf %152 : vector<32x32xf32> to vector<32x32xbf16>
    %c0_61 = arith.constant 0 : index
    %c0_62 = arith.constant 0 : index
    %c0_63 = arith.constant 0 : index
    %154 = vector.load %arg14[%c0_61, %c0_62, %c0_63] : memref<1x32x64xbf16, #tpu.memory_space<vmem>>, vector<1x32x64xbf16>
    %155 = vector.shape_cast %154 : vector<1x32x64xbf16> to vector<32x64xbf16>
    %cst_64 = arith.constant dense<0.000000e+00> : vector<32x64xf32>
    %156 = tpu.matmul %153, %155, %cst_64 {dimension_numbers = #tpu.dot_dimension_numbers<[1], [0], [0], [1], [0, 0, 1, 1], [], []>} : vector<32x32xbf16>, vector<32x64xbf16>, vector<32x64xf32> -> vector<32x64xf32>
    %c0_65 = arith.constant 0 : index
    %c0_66 = arith.constant 0 : index
    %c0_67 = arith.constant 0 : index
    %157 = vector.load %arg15[%c0_65, %c0_66, %c0_67] : memref<1x1x64xf32, #tpu.memory_space<vmem>>, vector<1x1x64xf32>
    %158 = vector.shape_cast %157 : vector<1x1x64xf32> to vector<1x64xf32>
    %159 = vector.broadcast %158 : vector<1x64xf32> to vector<32x64xf32>
    %160 = arith.addf %156, %159 : vector<32x64xf32>
    %161 = vector.extract_strided_slice %160 {offsets = [0, 0], sizes = [32, 32], strides = [1, 1]} : vector<32x64xf32> to vector<32x32xf32>
    %162 = vector.shape_cast %161 : vector<32x32xf32> to vector<2x16x32xf32>
    %163 = arith.truncf %162 : vector<2x16x32xf32> to vector<2x16x32xbf16>
    %164 = vector.extract_strided_slice %160 {offsets = [0, 32], sizes = [32, 32], strides = [1, 1]} : vector<32x64xf32> to vector<32x32xf32>
    %165 = vector.shape_cast %164 : vector<32x32xf32> to vector<2x16x32xf32>
    %166 = arith.truncf %165 : vector<2x16x32xf32> to vector<2x16x32xbf16>
    %167 = vector.extract_strided_slice %151 {offsets = [0, 0, 0], sizes = [2, 8, 8], strides = [1, 1, 1]} : vector<2x8x32xbf16> to vector<2x8x8xbf16>
    %168 = vector.extract_strided_slice %163 {offsets = [0, 0, 0], sizes = [2, 16, 8], strides = [1, 1, 1]} : vector<2x16x32xbf16> to vector<2x16x8xbf16>
    "tpu.trace_start"() <{level = 10 : i32, message = "btd,bsd->bts"}> : () -> ()
    %cst_68 = arith.constant dense<0.000000e+00> : vector<2x8x16xf32>
    %169 = tpu.matmul %167, %168, %cst_68 {dimension_numbers = #tpu.dot_dimension_numbers<[2], [2], [1], [1], [0, 0, 0, 1, 1, 1], [0], [0]>} : vector<2x8x8xbf16>, vector<2x16x8xbf16>, vector<2x8x16xf32> -> vector<2x8x16xf32>
    "tpu.trace_stop"() : () -> ()
    %cst_69 = arith.constant dense<0xFF800000> : vector<2x8xf32>
    %170 = vector.multi_reduction <maximumf>, %169, %cst_69 [2] : vector<2x8x16xf32> to vector<2x8xf32>
    %171 = vector.shape_cast %170 : vector<2x8xf32> to vector<2x8x1xf32>
    %172 = vector.broadcast %171 : vector<2x8x1xf32> to vector<2x8x16xf32>
    %173 = arith.subf %169, %172 : vector<2x8x16xf32>
    %174 = math.exp %173 : vector<2x8x16xf32>
    %cst_70 = arith.constant dense<0.000000e+00> : vector<2x8xf32>
    %175 = vector.multi_reduction <add>, %174, %cst_70 [2] : vector<2x8x16xf32> to vector<2x8xf32>
    %176 = vector.shape_cast %175 : vector<2x8xf32> to vector<2x8x1xf32>
    %177 = tpu.reciprocal %176 {approx = true} : vector<2x8x1xf32> -> vector<2x8x1xf32>
    %178 = vector.broadcast %177 : vector<2x8x1xf32> to vector<2x8x16xf32>
    %179 = arith.mulf %174, %178 : vector<2x8x16xf32>
    %180 = arith.truncf %179 : vector<2x8x16xf32> to vector<2x8x16xbf16>
    %181 = vector.extract_strided_slice %166 {offsets = [0, 0, 0], sizes = [2, 16, 8], strides = [1, 1, 1]} : vector<2x16x32xbf16> to vector<2x16x8xbf16>
    "tpu.trace_start"() <{level = 10 : i32, message = "bts,bsd->btd"}> : () -> ()
    %cst_71 = arith.constant dense<0.000000e+00> : vector<2x8x8xf32>
    %182 = tpu.matmul %180, %181, %cst_71 {dimension_numbers = #tpu.dot_dimension_numbers<[2], [1], [1], [2], [0, 0, 0, 1, 1, 2], [0], [0]>} : vector<2x8x16xbf16>, vector<2x16x8xbf16>, vector<2x8x8xf32> -> vector<2x8x8xf32>
    "tpu.trace_stop"() : () -> ()
    %183 = vector.extract_strided_slice %151 {offsets = [0, 0, 8], sizes = [2, 8, 8], strides = [1, 1, 1]} : vector<2x8x32xbf16> to vector<2x8x8xbf16>
    %184 = vector.extract_strided_slice %163 {offsets = [0, 0, 8], sizes = [2, 16, 8], strides = [1, 1, 1]} : vector<2x16x32xbf16> to vector<2x16x8xbf16>
    "tpu.trace_start"() <{level = 10 : i32, message = "btd,bsd->bts"}> : () -> ()
    %cst_72 = arith.constant dense<0.000000e+00> : vector<2x8x16xf32>
    %185 = tpu.matmul %183, %184, %cst_72 {dimension_numbers = #tpu.dot_dimension_numbers<[2], [2], [1], [1], [0, 0, 0, 1, 1, 1], [0], [0]>} : vector<2x8x8xbf16>, vector<2x16x8xbf16>, vector<2x8x16xf32> -> vector<2x8x16xf32>
    "tpu.trace_stop"() : () -> ()
    %cst_73 = arith.constant dense<0xFF800000> : vector<2x8xf32>
    %186 = vector.multi_reduction <maximumf>, %185, %cst_73 [2] : vector<2x8x16xf32> to vector<2x8xf32>
    %187 = vector.shape_cast %186 : vector<2x8xf32> to vector<2x8x1xf32>
    %188 = vector.broadcast %187 : vector<2x8x1xf32> to vector<2x8x16xf32>
    %189 = arith.subf %185, %188 : vector<2x8x16xf32>
    %190 = math.exp %189 : vector<2x8x16xf32>
    %cst_74 = arith.constant dense<0.000000e+00> : vector<2x8xf32>
    %191 = vector.multi_reduction <add>, %190, %cst_74 [2] : vector<2x8x16xf32> to vector<2x8xf32>
    %192 = vector.shape_cast %191 : vector<2x8xf32> to vector<2x8x1xf32>
    %193 = tpu.reciprocal %192 {approx = true} : vector<2x8x1xf32> -> vector<2x8x1xf32>
    %194 = vector.broadcast %193 : vector<2x8x1xf32> to vector<2x8x16xf32>
    %195 = arith.mulf %190, %194 : vector<2x8x16xf32>
    %196 = arith.truncf %195 : vector<2x8x16xf32> to vector<2x8x16xbf16>
    %197 = vector.extract_strided_slice %166 {offsets = [0, 0, 8], sizes = [2, 16, 8], strides = [1, 1, 1]} : vector<2x16x32xbf16> to vector<2x16x8xbf16>
    "tpu.trace_start"() <{level = 10 : i32, message = "bts,bsd->btd"}> : () -> ()
    %cst_75 = arith.constant dense<0.000000e+00> : vector<2x8x8xf32>
    %198 = tpu.matmul %196, %197, %cst_75 {dimension_numbers = #tpu.dot_dimension_numbers<[2], [1], [1], [2], [0, 0, 0, 1, 1, 2], [0], [0]>} : vector<2x8x16xbf16>, vector<2x16x8xbf16>, vector<2x8x8xf32> -> vector<2x8x8xf32>
    "tpu.trace_stop"() : () -> ()
    %199 = vector.extract_strided_slice %151 {offsets = [0, 0, 16], sizes = [2, 8, 8], strides = [1, 1, 1]} : vector<2x8x32xbf16> to vector<2x8x8xbf16>
    %200 = vector.extract_strided_slice %163 {offsets = [0, 0, 16], sizes = [2, 16, 8], strides = [1, 1, 1]} : vector<2x16x32xbf16> to vector<2x16x8xbf16>
    "tpu.trace_start"() <{level = 10 : i32, message = "btd,bsd->bts"}> : () -> ()
    %cst_76 = arith.constant dense<0.000000e+00> : vector<2x8x16xf32>
    %201 = tpu.matmul %199, %200, %cst_76 {dimension_numbers = #tpu.dot_dimension_numbers<[2], [2], [1], [1], [0, 0, 0, 1, 1, 1], [0], [0]>} : vector<2x8x8xbf16>, vector<2x16x8xbf16>, vector<2x8x16xf32> -> vector<2x8x16xf32>
    "tpu.trace_stop"() : () -> ()
    %cst_77 = arith.constant dense<0xFF800000> : vector<2x8xf32>
    %202 = vector.multi_reduction <maximumf>, %201, %cst_77 [2] : vector<2x8x16xf32> to vector<2x8xf32>
    %203 = vector.shape_cast %202 : vector<2x8xf32> to vector<2x8x1xf32>
    %204 = vector.broadcast %203 : vector<2x8x1xf32> to vector<2x8x16xf32>
    %205 = arith.subf %201, %204 : vector<2x8x16xf32>
    %206 = math.exp %205 : vector<2x8x16xf32>
    %cst_78 = arith.constant dense<0.000000e+00> : vector<2x8xf32>
    %207 = vector.multi_reduction <add>, %206, %cst_78 [2] : vector<2x8x16xf32> to vector<2x8xf32>
    %208 = vector.shape_cast %207 : vector<2x8xf32> to vector<2x8x1xf32>
    %209 = tpu.reciprocal %208 {approx = true} : vector<2x8x1xf32> -> vector<2x8x1xf32>
    %210 = vector.broadcast %209 : vector<2x8x1xf32> to vector<2x8x16xf32>
    %211 = arith.mulf %206, %210 : vector<2x8x16xf32>
    %212 = arith.truncf %211 : vector<2x8x16xf32> to vector<2x8x16xbf16>
    %213 = vector.extract_strided_slice %166 {offsets = [0, 0, 16], sizes = [2, 16, 8], strides = [1, 1, 1]} : vector<2x16x32xbf16> to vector<2x16x8xbf16>
    "tpu.trace_start"() <{level = 10 : i32, message = "bts,bsd->btd"}> : () -> ()
    %cst_79 = arith.constant dense<0.000000e+00> : vector<2x8x8xf32>
    %214 = tpu.matmul %212, %213, %cst_79 {dimension_numbers = #tpu.dot_dimension_numbers<[2], [1], [1], [2], [0, 0, 0, 1, 1, 2], [0], [0]>} : vector<2x8x16xbf16>, vector<2x16x8xbf16>, vector<2x8x8xf32> -> vector<2x8x8xf32>
    "tpu.trace_stop"() : () -> ()
    %215 = vector.extract_strided_slice %151 {offsets = [0, 0, 24], sizes = [2, 8, 8], strides = [1, 1, 1]} : vector<2x8x32xbf16> to vector<2x8x8xbf16>
    %216 = vector.extract_strided_slice %163 {offsets = [0, 0, 24], sizes = [2, 16, 8], strides = [1, 1, 1]} : vector<2x16x32xbf16> to vector<2x16x8xbf16>
    "tpu.trace_start"() <{level = 10 : i32, message = "btd,bsd->bts"}> : () -> ()
    %cst_80 = arith.constant dense<0.000000e+00> : vector<2x8x16xf32>
    %217 = tpu.matmul %215, %216, %cst_80 {dimension_numbers = #tpu.dot_dimension_numbers<[2], [2], [1], [1], [0, 0, 0, 1, 1, 1], [0], [0]>} : vector<2x8x8xbf16>, vector<2x16x8xbf16>, vector<2x8x16xf32> -> vector<2x8x16xf32>
    "tpu.trace_stop"() : () -> ()
    %cst_81 = arith.constant dense<0xFF800000> : vector<2x8xf32>
    %218 = vector.multi_reduction <maximumf>, %217, %cst_81 [2] : vector<2x8x16xf32> to vector<2x8xf32>
    %219 = vector.shape_cast %218 : vector<2x8xf32> to vector<2x8x1xf32>
    %220 = vector.broadcast %219 : vector<2x8x1xf32> to vector<2x8x16xf32>
    %221 = arith.subf %217, %220 : vector<2x8x16xf32>
    %222 = math.exp %221 : vector<2x8x16xf32>
    %cst_82 = arith.constant dense<0.000000e+00> : vector<2x8xf32>
    %223 = vector.multi_reduction <add>, %222, %cst_82 [2] : vector<2x8x16xf32> to vector<2x8xf32>
    %224 = vector.shape_cast %223 : vector<2x8xf32> to vector<2x8x1xf32>
    %225 = tpu.reciprocal %224 {approx = true} : vector<2x8x1xf32> -> vector<2x8x1xf32>
    %226 = vector.broadcast %225 : vector<2x8x1xf32> to vector<2x8x16xf32>
    %227 = arith.mulf %222, %226 : vector<2x8x16xf32>
    %228 = arith.truncf %227 : vector<2x8x16xf32> to vector<2x8x16xbf16>
    %229 = vector.extract_strided_slice %166 {offsets = [0, 0, 24], sizes = [2, 16, 8], strides = [1, 1, 1]} : vector<2x16x32xbf16> to vector<2x16x8xbf16>
    "tpu.trace_start"() <{level = 10 : i32, message = "bts,bsd->btd"}> : () -> ()
    %cst_83 = arith.constant dense<0.000000e+00> : vector<2x8x8xf32>
    %230 = tpu.matmul %228, %229, %cst_83 {dimension_numbers = #tpu.dot_dimension_numbers<[2], [1], [1], [2], [0, 0, 0, 1, 1, 2], [0], [0]>} : vector<2x8x16xbf16>, vector<2x16x8xbf16>, vector<2x8x8xf32> -> vector<2x8x8xf32>
    "tpu.trace_stop"() : () -> ()
    %231 = tpu.concatenate %182, %198, %214, %230 in 2 : vector<2x8x8xf32>, vector<2x8x8xf32>, vector<2x8x8xf32>, vector<2x8x8xf32> -> vector<2x8x32xf32>
    %232 = vector.shape_cast %231 : vector<2x8x32xf32> to vector<16x32xf32>
    %233 = arith.truncf %232 : vector<16x32xf32> to vector<16x32xbf16>
    %c0_84 = arith.constant 0 : index
    %c0_85 = arith.constant 0 : index
    %c0_86 = arith.constant 0 : index
    %234 = vector.load %arg16[%c0_84, %c0_85, %c0_86] : memref<1x32x32xbf16, #tpu.memory_space<vmem>>, vector<1x32x32xbf16>
    %235 = vector.shape_cast %234 : vector<1x32x32xbf16> to vector<32x32xbf16>
    %cst_87 = arith.constant dense<0.000000e+00> : vector<16x32xf32>
    %236 = tpu.matmul %233, %235, %cst_87 {dimension_numbers = #tpu.dot_dimension_numbers<[1], [0], [0], [1], [0, 0, 1, 1], [], []>} : vector<16x32xbf16>, vector<32x32xbf16>, vector<16x32xf32> -> vector<16x32xf32>
    %c0_88 = arith.constant 0 : index
    %c0_89 = arith.constant 0 : index
    %c0_90 = arith.constant 0 : index
    %237 = vector.load %arg17[%c0_88, %c0_89, %c0_90] : memref<1x1x32xf32, #tpu.memory_space<vmem>>, vector<1x1x32xf32>
    %238 = vector.shape_cast %237 : vector<1x1x32xf32> to vector<1x32xf32>
    %239 = vector.broadcast %238 : vector<1x32xf32> to vector<16x32xf32>
    %240 = arith.addf %236, %239 : vector<16x32xf32>
    %241 = vector.shape_cast %240 : vector<16x32xf32> to vector<2x8x32xf32>
    %c0_91 = arith.constant 0 : index
    %c0_92 = arith.constant 0 : index
    %c0_93 = arith.constant 0 : index
    %242 = vector.load %arg18[%c0_91, %c0_92, %c0_93] : memref<1x1x32xf32, #tpu.memory_space<vmem>>, vector<1x1x32xf32>
    %243 = vector.shape_cast %242 : vector<1x1x32xf32> to vector<1x32xf32>
    %c0_94 = arith.constant 0 : index
    %c0_95 = arith.constant 0 : index
    %c0_96 = arith.constant 0 : index
    %244 = vector.load %arg19[%c0_94, %c0_95, %c0_96] : memref<1x1x32xf32, #tpu.memory_space<vmem>>, vector<1x1x32xf32>
    %245 = vector.shape_cast %244 : vector<1x1x32xf32> to vector<1x32xf32>
    %246 = arith.addf %138, %241 : vector<2x8x32xf32>
    %cst_97 = arith.constant dense<0.000000e+00> : vector<2x8xf32>
    %247 = vector.multi_reduction <add>, %246, %cst_97 [2] : vector<2x8x32xf32> to vector<2x8xf32>
    %248 = vector.shape_cast %247 : vector<2x8xf32> to vector<2x8x1xf32>
    %cst_98 = arith.constant 3.200000e+01 : f32
    %249 = vector.broadcast %cst_98 : f32 to vector<2x8x1xf32>
    %250 = arith.divf %248, %249 : vector<2x8x1xf32>
    %251 = vector.broadcast %250 : vector<2x8x1xf32> to vector<2x8x32xf32>
    %252 = arith.subf %246, %251 : vector<2x8x32xf32>
    %253 = arith.mulf %252, %252 : vector<2x8x32xf32>
    %cst_99 = arith.constant dense<0.000000e+00> : vector<2x8xf32>
    %254 = vector.multi_reduction <add>, %253, %cst_99 [2] : vector<2x8x32xf32> to vector<2x8xf32>
    %255 = vector.shape_cast %254 : vector<2x8xf32> to vector<2x8x1xf32>
    %cst_100 = arith.constant 3.200000e+01 : f32
    %256 = vector.broadcast %cst_100 : f32 to vector<2x8x1xf32>
    %257 = arith.divf %255, %256 : vector<2x8x1xf32>
    %cst_101 = arith.constant 9.99999974E-6 : f32
    %258 = vector.broadcast %cst_101 : f32 to vector<2x8x1xf32>
    %259 = arith.addf %257, %258 : vector<2x8x1xf32>
    %260 = math.rsqrt %259 : vector<2x8x1xf32>
    %261 = vector.broadcast %260 : vector<2x8x1xf32> to vector<2x8x32xf32>
    %262 = arith.mulf %252, %261 : vector<2x8x32xf32>
    %263 = vector.shape_cast %243 : vector<1x32xf32> to vector<1x1x32xf32>
    %264 = vector.broadcast %263 : vector<1x1x32xf32> to vector<2x8x32xf32>
    %265 = arith.mulf %262, %264 : vector<2x8x32xf32>
    %266 = vector.shape_cast %245 : vector<1x32xf32> to vector<1x1x32xf32>
    %267 = vector.broadcast %266 : vector<1x1x32xf32> to vector<2x8x32xf32>
    %268 = arith.addf %265, %267 : vector<2x8x32xf32>
    %269 = vector.shape_cast %268 : vector<2x8x32xf32> to vector<16x32xf32>
    %270 = arith.truncf %269 : vector<16x32xf32> to vector<16x32xbf16>
    %c0_102 = arith.constant 0 : index
    %c0_103 = arith.constant 0 : index
    %c0_104 = arith.constant 0 : index
    %271 = vector.load %arg20[%c0_102, %c0_103, %c0_104] : memref<1x32x64xbf16, #tpu.memory_space<vmem>>, vector<1x32x64xbf16>
    %272 = vector.shape_cast %271 : vector<1x32x64xbf16> to vector<32x64xbf16>
    %cst_105 = arith.constant dense<0.000000e+00> : vector<16x64xf32>
    %273 = tpu.matmul %270, %272, %cst_105 {dimension_numbers = #tpu.dot_dimension_numbers<[1], [0], [0], [1], [0, 0, 1, 1], [], []>} : vector<16x32xbf16>, vector<32x64xbf16>, vector<16x64xf32> -> vector<16x64xf32>
    %c0_106 = arith.constant 0 : index
    %c0_107 = arith.constant 0 : index
    %c0_108 = arith.constant 0 : index
    %274 = vector.load %arg21[%c0_106, %c0_107, %c0_108] : memref<1x1x64xf32, #tpu.memory_space<vmem>>, vector<1x1x64xf32>
    %275 = vector.shape_cast %274 : vector<1x1x64xf32> to vector<1x64xf32>
    %276 = vector.broadcast %275 : vector<1x64xf32> to vector<16x64xf32>
    %277 = arith.addf %273, %276 : vector<16x64xf32>
    %cst_109 = arith.constant 0.000000e+00 : f32
    %278 = vector.broadcast %cst_109 : f32 to vector<16x64xf32>
    %279 = arith.maximumf %277, %278 : vector<16x64xf32>
    %280 = arith.truncf %279 : vector<16x64xf32> to vector<16x64xbf16>
    %c0_110 = arith.constant 0 : index
    %c0_111 = arith.constant 0 : index
    %c0_112 = arith.constant 0 : index
    %281 = vector.load %arg22[%c0_110, %c0_111, %c0_112] : memref<1x64x32xbf16, #tpu.memory_space<vmem>>, vector<1x64x32xbf16>
    %282 = vector.shape_cast %281 : vector<1x64x32xbf16> to vector<64x32xbf16>
    %cst_113 = arith.constant dense<0.000000e+00> : vector<16x32xf32>
    %283 = tpu.matmul %280, %282, %cst_113 {dimension_numbers = #tpu.dot_dimension_numbers<[1], [0], [0], [1], [0, 0, 1, 1], [], []>} : vector<16x64xbf16>, vector<64x32xbf16>, vector<16x32xf32> -> vector<16x32xf32>
    %c0_114 = arith.constant 0 : index
    %c0_115 = arith.constant 0 : index
    %c0_116 = arith.constant 0 : index
    %284 = vector.load %arg23[%c0_114, %c0_115, %c0_116] : memref<1x1x32xf32, #tpu.memory_space<vmem>>, vector<1x1x32xf32>
    %285 = vector.shape_cast %284 : vector<1x1x32xf32> to vector<1x32xf32>
    %286 = vector.broadcast %285 : vector<1x32xf32> to vector<16x32xf32>
    %287 = arith.addf %283, %286 : vector<16x32xf32>
    %288 = vector.shape_cast %287 : vector<16x32xf32> to vector<2x8x32xf32>
    %c0_117 = arith.constant 0 : index
    %c0_118 = arith.constant 0 : index
    %c0_119 = arith.constant 0 : index
    %289 = vector.load %arg24[%c0_117, %c0_118, %c0_119] : memref<1x1x32xf32, #tpu.memory_space<vmem>>, vector<1x1x32xf32>
    %290 = vector.shape_cast %289 : vector<1x1x32xf32> to vector<1x32xf32>
    %c0_120 = arith.constant 0 : index
    %c0_121 = arith.constant 0 : index
    %c0_122 = arith.constant 0 : index
    %291 = vector.load %arg25[%c0_120, %c0_121, %c0_122] : memref<1x1x32xf32, #tpu.memory_space<vmem>>, vector<1x1x32xf32>
    %292 = vector.shape_cast %291 : vector<1x1x32xf32> to vector<1x32xf32>
    %293 = arith.addf %268, %288 : vector<2x8x32xf32>
    %cst_123 = arith.constant dense<0.000000e+00> : vector<2x8xf32>
    %294 = vector.multi_reduction <add>, %293, %cst_123 [2] : vector<2x8x32xf32> to vector<2x8xf32>
    %295 = vector.shape_cast %294 : vector<2x8xf32> to vector<2x8x1xf32>
    %cst_124 = arith.constant 3.200000e+01 : f32
    %296 = vector.broadcast %cst_124 : f32 to vector<2x8x1xf32>
    %297 = arith.divf %295, %296 : vector<2x8x1xf32>
    %298 = vector.broadcast %297 : vector<2x8x1xf32> to vector<2x8x32xf32>
    %299 = arith.subf %293, %298 : vector<2x8x32xf32>
    %300 = arith.mulf %299, %299 : vector<2x8x32xf32>
    %cst_125 = arith.constant dense<0.000000e+00> : vector<2x8xf32>
    %301 = vector.multi_reduction <add>, %300, %cst_125 [2] : vector<2x8x32xf32> to vector<2x8xf32>
    %302 = vector.shape_cast %301 : vector<2x8xf32> to vector<2x8x1xf32>
    %cst_126 = arith.constant 3.200000e+01 : f32
    %303 = vector.broadcast %cst_126 : f32 to vector<2x8x1xf32>
    %304 = arith.divf %302, %303 : vector<2x8x1xf32>
    %cst_127 = arith.constant 9.99999974E-6 : f32
    %305 = vector.broadcast %cst_127 : f32 to vector<2x8x1xf32>
    %306 = arith.addf %304, %305 : vector<2x8x1xf32>
    %307 = math.rsqrt %306 : vector<2x8x1xf32>
    %308 = vector.broadcast %307 : vector<2x8x1xf32> to vector<2x8x32xf32>
    %309 = arith.mulf %299, %308 : vector<2x8x32xf32>
    %310 = vector.shape_cast %290 : vector<1x32xf32> to vector<1x1x32xf32>
    %311 = vector.broadcast %310 : vector<1x1x32xf32> to vector<2x8x32xf32>
    %312 = arith.mulf %309, %311 : vector<2x8x32xf32>
    %313 = vector.shape_cast %292 : vector<1x32xf32> to vector<1x1x32xf32>
    %314 = vector.broadcast %313 : vector<1x1x32xf32> to vector<2x8x32xf32>
    %315 = arith.addf %312, %314 : vector<2x8x32xf32>
    %c0_128 = arith.constant 0 : index
    %c0_129 = arith.constant 0 : index
    %c0_130 = arith.constant 0 : index
    %316 = vector.load %arg26[%c0_128, %c0_129, %c0_130] : memref<2x8x32xf32, #tpu.memory_space<vmem>>, vector<2x8x32xf32>
    tpu.vector_store %arg26[%c0_128, %c0_129, %c0_130], %315 {strides = array<i32>} : memref<2x8x32xf32, #tpu.memory_space<vmem>>, vector<2x8x32xf32>,
    return
  }
  func.func @transform_0(%arg0: i32, %arg1: i32) -> (i32, i32, i32) {
    %c0_i32 = arith.constant 0 : i32
    %c0_i32_0 = arith.constant 0 : i32
    %c0_i32_1 = arith.constant 0 : i32
    return %arg0, %c0_i32, %c0_i32_0 : i32, i32, i32
  }
  func.func @transform_1(%arg0: i32, %arg1: i32) -> (i32, i32, i32) {
    %c0_i32 = arith.constant 0 : i32
    %c0_i32_0 = arith.constant 0 : i32
    %c0_i32_1 = arith.constant 0 : i32
    return %arg0, %c0_i32, %c0_i32_0 : i32, i32, i32
  }
  func.func @transform_2(%arg0: i32, %arg1: i32) -> (i32, i32) {
    %c0_i32 = arith.constant 0 : i32
    %c0_i32_0 = arith.constant 0 : i32
    %c0_i32_1 = arith.constant 0 : i32
    return %c0_i32, %c0_i32_0 : i32, i32
  }
  func.func @transform_3(%arg0: i32, %arg1: i32) -> (i32, i32, i32) {
    %c0_i32 = arith.constant 0 : i32
    %c0_i32_0 = arith.constant 0 : i32
    %c0_i32_1 = arith.constant 0 : i32
    return %arg0, %c0_i32, %c0_i32_0 : i32, i32, i32
  }
  func.func @transform_4(%arg0: i32, %arg1: i32) -> (i32, i32, i32) {
    %c0_i32 = arith.constant 0 : i32
    %c0_i32_0 = arith.constant 0 : i32
    %c0_i32_1 = arith.constant 0 : i32
    return %arg1, %c0_i32, %c0_i32_0 : i32, i32, i32
  }
  func.func @transform_5(%arg0: i32, %arg1: i32) -> (i32, i32, i32) {
    %c0_i32 = arith.constant 0 : i32
    %c0_i32_0 = arith.constant 0 : i32
    %c0_i32_1 = arith.constant 0 : i32
    return %arg1, %c0_i32, %c0_i32_0 : i32, i32, i32
  }
  func.func @transform_6(%arg0: i32, %arg1: i32) -> (i32, i32, i32) {
    %c0_i32 = arith.constant 0 : i32
    %c0_i32_0 = arith.constant 0 : i32
    %c0_i32_1 = arith.constant 0 : i32
    return %arg1, %c0_i32, %c0_i32_0 : i32, i32, i32
  }
  func.func @transform_7(%arg0: i32, %arg1: i32) -> (i32, i32, i32) {
    %c0_i32 = arith.constant 0 : i32
    %c0_i32_0 = arith.constant 0 : i32
    %c0_i32_1 = arith.constant 0 : i32
    return %arg1, %c0_i32, %c0_i32_0 : i32, i32, i32
  }
  func.func @transform_8(%arg0: i32, %arg1: i32) -> (i32, i32, i32) {
    %c0_i32 = arith.constant 0 : i32
    %c0_i32_0 = arith.constant 0 : i32
    %c0_i32_1 = arith.constant 0 : i32
    return %arg1, %c0_i32, %c0_i32_0 : i32, i32, i32
  }
  func.func @transform_9(%arg0: i32, %arg1: i32) -> (i32, i32, i32) {
    %c0_i32 = arith.constant 0 : i32
    %c0_i32_0 = arith.constant 0 : i32
    %c0_i32_1 = arith.constant 0 : i32
    return %arg1, %c0_i32, %c0_i32_0 : i32, i32, i32
  }
  func.func @transform_10(%arg0: i32, %arg1: i32) -> (i32, i32, i32) {
    %c0_i32 = arith.constant 0 : i32
    %c0_i32_0 = arith.constant 0 : i32
    %c0_i32_1 = arith.constant 0 : i32
    return %arg1, %c0_i32, %c0_i32_0 : i32, i32, i32
  }
  func.func @transform_11(%arg0: i32, %arg1: i32) -> (i32, i32, i32) {
    %c0_i32 = arith.constant 0 : i32
    %c0_i32_0 = arith.constant 0 : i32
    %c0_i32_1 = arith.constant 0 : i32
    return %arg1, %c0_i32, %c0_i32_0 : i32, i32, i32
  }
  func.func @transform_12(%arg0: i32, %arg1: i32) -> (i32, i32, i32) {
    %c0_i32 = arith.constant 0 : i32
    %c0_i32_0 = arith.constant 0 : i32
    %c0_i32_1 = arith.constant 0 : i32
    return %arg1, %c0_i32, %c0_i32_0 : i32, i32, i32
  }
  func.func @transform_13(%arg0: i32, %arg1: i32) -> (i32, i32, i32) {
    %c0_i32 = arith.constant 0 : i32
    %c0_i32_0 = arith.constant 0 : i32
    %c0_i32_1 = arith.constant 0 : i32
    return %arg1, %c0_i32, %c0_i32_0 : i32, i32, i32
  }
  func.func @transform_14(%arg0: i32, %arg1: i32) -> (i32, i32, i32) {
    %c0_i32 = arith.constant 0 : i32
    %c0_i32_0 = arith.constant 0 : i32
    %c0_i32_1 = arith.constant 0 : i32
    return %arg1, %c0_i32, %c0_i32_0 : i32, i32, i32
  }
  func.func @transform_15(%arg0: i32, %arg1: i32) -> (i32, i32, i32) {
    %c0_i32 = arith.constant 0 : i32
    %c0_i32_0 = arith.constant 0 : i32
    %c0_i32_1 = arith.constant 0 : i32
    return %arg1, %c0_i32, %c0_i32_0 : i32, i32, i32
  }
  func.func @transform_16(%arg0: i32, %arg1: i32) -> (i32, i32, i32) {
    %c0_i32 = arith.constant 0 : i32
    %c0_i32_0 = arith.constant 0 : i32
    %c0_i32_1 = arith.constant 0 : i32
    return %arg1, %c0_i32, %c0_i32_0 : i32, i32, i32
  }
  func.func @transform_17(%arg0: i32, %arg1: i32) -> (i32, i32, i32) {
    %c0_i32 = arith.constant 0 : i32
    %c0_i32_0 = arith.constant 0 : i32
    %c0_i32_1 = arith.constant 0 : i32
    return %arg1, %c0_i32, %c0_i32_0 : i32, i32, i32
  }
  func.func @transform_18(%arg0: i32, %arg1: i32) -> (i32, i32, i32) {
    %c0_i32 = arith.constant 0 : i32
    %c0_i32_0 = arith.constant 0 : i32
    %c0_i32_1 = arith.constant 0 : i32
    return %arg1, %c0_i32, %c0_i32_0 : i32, i32, i32
  }
  func.func @transform_19(%arg0: i32, %arg1: i32) -> (i32, i32, i32) {
    %c0_i32 = arith.constant 0 : i32
    %c0_i32_0 = arith.constant 0 : i32
    %c0_i32_1 = arith.constant 0 : i32
    return %arg1, %c0_i32, %c0_i32_0 : i32, i32, i32
  }
  func.func @transform_20(%arg0: i32, %arg1: i32) -> (i32, i32, i32) {
    %c0_i32 = arith.constant 0 : i32
    %c0_i32_0 = arith.constant 0 : i32
    %c0_i32_1 = arith.constant 0 : i32
    return %arg1, %c0_i32, %c0_i32_0 : i32, i32, i32
  }
  func.func @transform_21(%arg0: i32, %arg1: i32) -> (i32, i32, i32) {
    %c0_i32 = arith.constant 0 : i32
    %c0_i32_0 = arith.constant 0 : i32
    %c0_i32_1 = arith.constant 0 : i32
    return %arg1, %c0_i32, %c0_i32_0 : i32, i32, i32
  }
  func.func @transform_22(%arg0: i32, %arg1: i32) -> (i32, i32, i32) {
    %c0_i32 = arith.constant 0 : i32
    %c0_i32_0 = arith.constant 0 : i32
    %c0_i32_1 = arith.constant 0 : i32
    return %arg1, %c0_i32, %c0_i32_0 : i32, i32, i32
  }
  func.func @transform_23(%arg0: i32, %arg1: i32) -> (i32, i32, i32) {
    %c0_i32 = arith.constant 0 : i32
    %c0_i32_0 = arith.constant 0 : i32
    %c0_i32_1 = arith.constant 0 : i32
    return %arg1, %c0_i32, %c0_i32_0 : i32, i32, i32
  }
  func.func @transform_24(%arg0: i32, %arg1: i32) -> (i32, i32, i32) {
    %c0_i32 = arith.constant 0 : i32
    %c0_i32_0 = arith.constant 0 : i32
    %c0_i32_1 = arith.constant 0 : i32
    return %arg0, %c0_i32, %c0_i32_0 : i32, i32, i32
  }
}

</mosaic_0001>

<bundles_post_ra>
// kernel: transformer_decoder_forward.3
= control target key start
LH: loop header
LB: loop body
LE: loop exit
PB: predicated region body
PF: predicated region fallthrough
CT: control target
= control target key end

     0   :  { %v150_v1 = vmov 0.0   ;;  %vm151_vm0 = vmmov 0   ;;  %s193_s0 = inlined_call_operand.vmem [shape: f32[16,32], index: 0, kind: input, shape index: {}]   ;;  %s194_s1 = inlined_call_operand.vmem [shape: bf16[32,64], index: 1, kind: input, shape index: {}]   ;;  %s195_s2 = inlined_call_operand.vmem [shape: f32[1,64], index: 2, kind: input, shape index: {}]   ;;  %s196_s3 = inlined_call_operand.hbm [shape: f32[16,64], index: 3, kind: output, shape index: {}]  }
   0x1   :  { %v126_v0 = vld [vmem:[%s194_s1 + $0x8] sm:$0xff]   ;;  %113 = vmatprep.subr.bf16.mxu0 %v150_v1  ;;  %v127_v2 = vld [vmem:[%s194_s1] sm:$0xff]   ;;  %117 = vmatprep.mubr.msk.bf16.mxu0 %vm151_vm0, %v150_v1 }
   0x2   :  { %114 = vmatpush3.bf16.msra.mxu0 %v126_v0  ;;  %v16_v3 = vld [vmem:[%s193_s0] sm:$0xff]  ;;  %v17_v4 = vld [vmem:[%s193_s0 + $0x8] sm:$0xff] }
   0x3   :  { %115 = vmatprep.subr.bf16.mxu0 %v150_v1 }
   0x4   :  { %8 = vsyncpa [#allocation3], 0  ;;  %v18_v5 = vpack.c.bf16 %v17_v4, %v16_v3  ;;  %vm42_vm1 = vcmask 261120   ;;  %v106_v6 = vld [vmem:[%s195_s2] ss:$0 sm:$0xff]  ;;  %vm87_vm2 = vcmask 523264  }
   0x5   :  { %s152_s1 = smov [#allocation2]  }
   0x6   :  { %116 = vmatpush3.bf16.msra.mxu0 %v127_v2  ;;  %s95_s22 = sshll.u32 %s152_s1, 4  ;;  %s96_s22 = int_to_ptr.vmem [resolvable:$true] %s95_s22 }
   0x7   :  { %s128_s0 = scalar_lea.vmem %s96_s22, 256  ;;  %p133_p1 = scmp.lt.s32.totalorder %s96_s22, %s96_s22 }
   0x8   :  { %p129_p0 = scmp.ne.s32.totalorder %s96_s22, %s128_s0  ;;  %p134_p2 = scmp.lt.s32.totalorder %s128_s0, %s128_s0 }
   0x9   :  { %118 = vmatmul.mubr.msk.bf16.vlgmr.msra.gmra.mxu0 %vm42_vm1, %v18_v5 }
   0xa   :  { %p135_p3 = por %p134_p2, %p133_p1 }
   0xc   :  { %p136_p4 = pnand %p135_p3, %p129_p0 }
  0xc9   :  { %v80_v7 = vpop.f32.mrf.mxu0 }
  0xca   :  { %v81_v8 = vadd.f32 %v106_v6, %v80_v7 }
  0xcb   :  { %v119_v9 = vpop.f32.mrf.mxu0 }
  0xcc   :  { %88 = vst.msk [vmem:[#allocation2] sm:$0xff] %vm87_vm2, %v81_v8 }
  0xcd   :  { %v83_v10 = vpop.f32.mrf.mxu0 }
  0xce   :  { %v84_v11 = vadd.f32 %v106_v6, %v83_v10 }
  0xcf   :  { %v120_v12 = vpop.f32.mrf.mxu0 }
  0xd0   :  { %89 = vst.msk [vmem:[#allocation2 + $0x8] sm:$0xff] %vm87_vm2, %v84_v11 }
  0xd1   :  { %139 = shalt.err (!%p136_p4)
}
  0xd2   :  { %s153_s2 = smov 128   ;;  %s154_s23 = smov 8  }
  0xd3   :  { %101 = dma.vmem_to_hbm [thread:$0]  %s96_s22, 256, %s196_s3, [#allocation3], %s153_s2, %s153_s2, %s154_s23  }
  0xd4   :  { %148 = dma.done.wait [#allocation3], 256  }
  0xd5   :  { %149 = vsyncadd [#allocation3], 4294967040 }
  0xd6   :  { %105 = vsyncpa [#allocation3], 1 }

// kernel: transformer_decoder_forward.2
= control target key start
LH: loop header
LB: loop body
LE: loop exit
PB: predicated region body
PF: predicated region fallthrough
CT: control target
= control target key end

     0   :  { %s4685_s26 = smov 0   ;;  %s4687_s27 = smov 0   ;;  %s5337_s0 = inlined_call_operand.vmem [shape: f32[2,8,32], index: 0, kind: input, shape index: {}]   ;;  %s5338_s1 = inlined_call_operand.vmem [shape: f32[2,16,32], index: 1, kind: input, shape index: {}]   ;;  %s5339_s2 = inlined_call_operand.vmem [shape: f32[8,8], index: 2, kind: input, shape index: {}]   ;;  %s5340_s3 = inlined_call_operand.vmem [shape: f32[2,1,8], index: 3, kind: input, shape index: {}]   ;;  %s5341_s4 = inlined_call_operand.vmem [shape: bf16[2,32,96], index: 4, kind: input, shape index: {}]   ;;  %s5342_s5 = inlined_call_operand.vmem [shape: f32[2,1,96], index: 5, kind: input, shape index: {}]   ;;  %s5343_s6 = inlined_call_operand.vmem [shape: bf16[2,32,32], index: 6, kind: input, shape index: {}]   ;;  %s5344_s7 = inlined_call_operand.vmem [shape: f32[2,1,32], index: 7, kind: input, shape index: {}]   ;;  %s5345_s8 = inlined_call_operand.vmem [shape: f32[2,1,32], index: 8, kind: input, shape index: {}]   ;;  %s5346_s9 = inlined_call_operand.vmem [shape: f32[2,1,32], index: 9, kind: input, shape index: {}]   ;;  %s5347_s10 = inlined_call_operand.vmem [shape: bf16[2,32,32], index: 10, kind: input, shape index: {}]   ;;  %s5348_s11 = inlined_call_operand.vmem [shape: f32[2,1,32], index: 11, kind: input, shape index: {}]   ;;  %s5349_s12 = inlined_call_operand.vmem [shape: bf16[2,32,64], index: 12, kind: input, shape index: {}]   ;;  %s5350_s13 = inlined_call_operand.vmem [shape: f32[2,1,64], index: 13, kind: input, shape index: {}]   ;;  %s5351_s14 = inlined_call_operand.vmem [shape: bf16[2,32,32], index: 14, kind: input, shape index: {}]   ;;  %s5352_s15 = inlined_call_operand.vmem [shape: f32[2,1,32], index: 15, kind: input, shape index: {}]   ;;  %s5353_s16 = inlined_call_operand.vmem [shape: f32[2,1,32], index: 16, kind: input, shape index: {}]   ;;  %s5354_s17 = inlined_call_operand.vmem [shape: f32[2,1,32], index: 17, kind: input, shape index: {}]   ;;  %s5355_s18 = inlined_call_operand.vmem [shape: bf16[2,32,64], index: 18, kind: input, shape index: {}]   ;;  %s5356_s19 = inlined_call_operand.vmem [shape: f32[2,1,64], index: 19, kind: input, shape index: {}]   ;;  %s5357_s20 = inlined_call_operand.vmem [shape: bf16[2,64,32], index: 20, kind: input, shape index: {}]   ;;  %s5358_s21 = inlined_call_operand.vmem [shape: f32[2,1,32], index: 21, kind: input, shape index: {}]   ;;  %s5359_s22 = inlined_call_operand.vmem [shape: f32[2,1,32], index: 22, kind: input, shape index: {}]   ;;  %s5360_s23 = inlined_call_operand.vmem [shape: f32[2,1,32], index: 23, kind: input, shape index: {}]   ;;  %s5361_s24 = inlined_call_operand.vmem [shape: f32[2,8,32], index: 24, kind: output, shape index: {}]  }
   0x1   :  { %5374 = sst [smem:[#allocation7_spill]] %s5337_s0 }
   0x2   :  { %5375 = sst [smem:[#allocation8_spill]] %s5338_s1 }
   0x3   :  { %5376 = sst [smem:[#allocation9_spill]] %s5339_s2 }
   0x4   :  { %5377 = sst [smem:[#allocation10_spill]] %s5340_s3 }
   0x5   :  { %5378 = sst [smem:[#allocation11_spill]] %s5341_s4 }
   0x6   :  { %5379 = sst [smem:[#allocation12_spill]] %s5342_s5  ;;  %s4683_s5 = smov 0  }
   0x7   :  { %5380 = sst [smem:[#allocation13_spill]] %s5343_s6 }
   0x8   :  { %5381 = sst [smem:[#allocation14_spill]] %s5344_s7 }
   0x9   :  { %5382 = sst [smem:[#allocation15_spill]] %s5345_s8 }
   0xa   :  { %5383 = sst [smem:[#allocation16_spill]] %s5347_s10 }
   0xb   :  { %5384 = sst [smem:[#allocation17_spill]] %s5349_s12 }
   0xc   :  { %5385 = sst [smem:[#allocation18_spill]] %s5351_s14 }
   0xd   :  { %5386 = sst [smem:[#allocation19_spill]] %s5353_s16 }
   0xe   :  { %5387 = sst [smem:[#allocation20_spill]] %s5354_s17 }
   0xf   :  { %5388 = sst [smem:[#allocation21_spill]] %s5355_s18 }
  0x10   :  { %5389 = sst [smem:[#allocation22_spill]] %s5358_s21 }
  0x11   :  { %5390 = sst [smem:[#allocation23_spill]] %s5359_s22 }
  0x12   :  { %5391 = sst [smem:[#allocation24_spill]] %s5360_s23 }
  0x13   :  { %5392 = sst [smem:[#allocation25_spill]] %s5361_s24 }
  0x14 LB: > { %5393 = sst [smem:[#allocation2_spill]] %s4532_s5  ;;  %s43_s28 = sadd.s32 1, %s4536_s26  ;;  %s4540_s27 = sphi %s4687_s27, %s34_s27   ;;  %s4536_s26 = sphi %s4685_s26, %s5447_s26   ;;  %s4532_s5 = sphi %s4683_s5, %s5446_s5  }
  0x15   : > { %5394 = sst [smem:[#allocation3_spill]] %s4536_s26  ;;  %p3918_p0 = scmp.ge.s32.totalorder %s4540_s27, 1 }
  0x16   : > { %5395 = sst [smem:[#allocation4_spill]] %s4540_s27  ;;  %p44_p1 = scmp.ge.s32.totalorder %s43_s28, 2 }
  0x17   : > { %p871_p2 = scmp.lt.s32.totalorder %s4540_s27, 3 }
  0x18   : > { %s5449_s28 = smov (%p44_p1, %s43_s28), 0 }
  0x19   : > { %5396 = sst [smem:[#allocation5_spill]] %s5449_s28  ;;  %p872_p3 = pnand %p3918_p0, %p871_p2 }
  0x1b   : > { %875 = sbr.rel (%p872_p3) target bundleno = 7073 (0x1ba1), region = 116 }
  0x20   : > { %p1039_p4 = scmp.lt.s32.totalorder %s4532_s5, 1  ;;  %s5398_s8 = sld [smem:[#allocation11_spill]] }
  0x21   : > { %s5400_s26 = sld [smem:[#allocation13_spill]] }
  0x22   : > { %s4705_s6 = scalar_select %p1039_p4, %s4532_s5, 1 }
  0x23   : > { %s5403_s10 = sld [smem:[#allocation16_spill]] }
  0x24   : > { %s4009_s2 = sshll.u32 %s4705_s6, 4  ;;  %s5404_s12 = sld [smem:[#allocation17_spill]] }
  0x25   : > { %s5405_s14 = sld [smem:[#allocation18_spill]] }
  0x26   : > { %s4715_s4 = scalar_lea.vmem %s5398_s8, %s4009_s2  ;;  %s5408_s18 = sld [smem:[#allocation21_spill]] }
  0x27   : > { %5399 = sst [smem:[#allocation6_spill]] %s4715_s4  ;;  %s4720_s27 = scalar_lea.vmem %s5400_s26, %s4009_s2 }
  0x28   : > { %s5412_s25 = sld [smem:[#allocation2_spill]] }
  0x29   : > { %s4737_s26 = scalar_lea.vmem %s5403_s10, %s4009_s2 }
  0x2a   : > { %s4746_s21 = scalar_lea.vmem %s5404_s12, %s4009_s2 }
  0x2b   : > { %s4755_s7 = scalar_lea.vmem %s5405_s14, %s4009_s2  ;;  %s4015_s14 = sshll.u32 %s4705_s6, 5 }
  0x2c   : > { %s4772_s0 = scalar_lea.vmem %s5408_s18, %s4009_s2  ;;  %s4782_s22 = scalar_lea.vmem %s5357_s20, %s4015_s14 }
  0x2e   : > { %p3933_p5 = scmp.ne.s32.totalorder %s5412_s25, 0 }
  0x2f   : > { %s5413_s4 = sld [smem:[#allocation7_spill]] (!%p3933_p5) }
  0x30   : > { %1123 = sbr.rel (%p3933_p5) target bundleno = 55 (0x37), region = 120  ;;  %s5414_s10 = sld [smem:[#allocation25_spill]] (!%p3933_p5) }
  0x35   : > { %v1124_v0 = vld [vmem:[%s5413_s4] sm:$0xff]  ;;  %vm1126_vm0 = vcmask 261120   ;;  %v1125_v1 = vld [vmem:[%s5413_s4 + $0x8] sm:$0xff] }
  0x36   : > { %1127 = vst.msk [vmem:[%s5414_s10] sm:$0xff] %vm1126_vm0, %v1124_v0  ;;  %1128 = vst.msk [vmem:[%s5414_s10 + $0x8] sm:$0xff] %vm1126_vm0, %v1125_v1 }
  0x37 PF: > { %s5415_s18 = sld [smem:[#allocation6_spill]]  ;;  %v4542_v3 = vmov 0.0   ;;  %vm4543_vm1 = vmmov 0   ;;  %vm1178_vm2 = vcmask 261120   ;;  %s4544_s28 = smov 96   ;;  %vm1232_vm3 = vcmask 64512  }
  0x38   : > { %4104 = vmatprep.subr.bf16.mxu1 %v4542_v3  ;;  %4118 = vmatprep.subr.bf16.mxu0 %v4542_v3  ;;  %s5416_s2 = sld [smem:[#allocation25_spill]]  ;;  %s4545_s14 = smov 64   ;;  %vm1357_vm4 = vcmask 1043456   ;;  %vm2137_vm5 = vcmask 130048   ;;  %vm2140_vm6 = vcmask 195584   ;;  %vm3526_vm7 = vcmask 523264  }
  0x39   : > { %4108 = vmatprep.mubr.msk.bf16.mxu1 %vm4543_vm1, %v4542_v3  ;;  %4120 = vmatprep.mubr.msk.bf16.mxu0 %vm4543_vm1, %v4542_v3  ;;  %s5417_s8 = sld [smem:[#allocation12_spill]]  ;;  %s4548_s10 = smov 56  }
  0x3a   : > { %s5419_s1 = sld [smem:[#allocation9_spill]]  ;;  %s4549_s17 = smov 80  }
  0x3b   : > { %s5420_s5 = sld [smem:[#allocation10_spill]]  ;;  %s4552_s30 = smov 72  }
  0x3c   : > { %s4554_s25 = smov 40   ;;  %s5373_s3 = smov 8  }
  0x3d   : > { %v4426_v2 = vld [vmem:[%s5415_s18 + $0x8] sm:$0xff]   ;;  %v4427_v4 = vld [vmem:[%s5415_s18] sm:$0xff]   ;;  %s4551_s18 = smov 48  }
  0x3e   : > { %4105 = vmatpush3.bf16.msra.mxu1 %v4426_v2  ;;  %v4818_v5 = vld [vmem:[%s5416_s2] sm:$0xff]  ;;  %v4823_v6 = vld [vmem:[%s5416_s2 + $0x8] sm:$0xff] }
  0x3f   : > { %4106 = vmatprep.subr.bf16.mxu1 %v4542_v3  ;;  %v1154_v7 = vpack.c.bf16 %v4823_v6, %v4818_v5  ;;  %s5418_s24 = scalar_lea.vmem %s5417_s8, %s4705_s6  ;;  %s4546_s8 = smov 88  }
  0x40   : > { %v3936_v8 = vld [vmem:[%s5418_s24] ss:$0 sm:$0xff]  ;;  %s4547_s24 = smov 120  }
  0x41   : > { %v1135_v25 = vld [vmem:[%s5419_s1] sm:$0xff]  ;;  %s5421_s29 = smov %s5420_s5  ;;  %s4550_s1 = smov 112  }
  0x42   : > { %4107 = vmatpush3.bf16.msra.mxu1 %v4427_v4  ;;  %v3934_v26 = vld [vmem:[%s5420_s5] ss:$0 sm:$0xff]  ;;  %v3935_v28 = vld [vmem:[%s5421_s29 + $0x1] ss:$0 sm:$0xff]  ;;  %s4553_s5 = smov 104  }
  0x43   : > { %4112 = vmatprep.subr.bf16.mxu1 %v4542_v3  ;;  %v1150_v27 = vadd.f32 %v3934_v26, %v1135_v25  ;;  %v1151_v30 = vadd.f32 %v3935_v28, %v1135_v25 }
  0x45   : > { %4109 = vmatmul.mubr.msk.bf16.vlgmr.msra.gmra.mxu1 %vm1178_vm2, %v1154_v7  ;;  %v4872_v29 = vmax.f32 %v1150_v27, -1e+30  ;;  %v4875_v33 = vmax.f32 %v1151_v30, -1e+30 }
  0x46   : > { %4114 = vmatprep.mubr.msk.bf16.mxu1 %vm4543_vm1, %v4542_v3 }
 0x105   : > { %v1216_v9 = vpop.f32.mrf.mxu1 }
 0x106   : > { %v1217_v10 = vadd.f32 %v3936_v8, %v1216_v9 }
 0x107   : > { %v4110_v11 = vpop.f32.mrf.mxu1 }
 0x108   : > { %v4839_v12 = vpack.c.bf16 %v1217_v10, %v1217_v10  ;;  %v1223_v19 = vmul.f32 0.35355338, %v1217_v10 }
 0x109   : > { %v1219_v13 = vpop.f32.mrf.mxu1 }
 0x10a   : > { %v1220_v14 = vadd.f32 %v3936_v8, %v1219_v13  ;;  %1230 = vrot.lane.b32.xlu0 %v4839_v12, %s4544_s28  ;;  %v4850_v22 = vpack.c.bf16 %v1223_v19, %v1223_v19 }
 0x10b   : > { %v4111_v15 = vpop.f32.mrf.mxu1 }
 0x10c   : > { %v4843_v16 = vpack.c.bf16 %v1220_v14, %v1220_v14  ;;  %v1224_v23 = vmul.f32 0.35355338, %v1220_v14 }
 0x10e   : > { %1280 = vrot.lane.b32.xlu0 %v4843_v16, %s4544_s28  ;;  %v4857_v24 = vpack.c.bf16 %v1224_v23, %v1224_v23 }
 0x17c   : > { %v1231_v17 = vpop.permute.xlu0 %1230 }
 0x17d   : > { %v1237_v18 = vsel %vm1232_vm3, %v1231_v17, 0 }
 0x17e   : > { %4113 = vmatpush3.bf16.xpose.msra.mxu1 %v1237_v18 }
 0x17f   : > { %4124 = vmatprep.subr.bf16.mxu1 %v4542_v3 }
 0x180   : > { %v1281_v20 = vpop.permute.xlu0 %1280 }
 0x181   : > { %v1286_v21 = vsel %vm1232_vm3, %v1281_v20, 0 }
 0x182   : > { %4119 = vmatpush3.bf16.xpose.msra.mxu0 %v1286_v21 }
 0x183   : > { %4130 = vmatprep.subr.bf16.mxu0 %v4542_v3 }
 0x185   : > { %4115 = vmatmul.mubr.msk.bf16.vlgmr.msra.gmra.mxu1 %vm1232_vm3, %v4850_v22 }
 0x186   : > { %4126 = vmatprep.mubr.msk.bf16.mxu1 %vm4543_vm1, %v4542_v3 }
 0x189   : > { %4121 = vmatmul.mubr.msk.bf16.vlgmr.msra.gmra.mxu0 %vm1232_vm3, %v4857_v24 }
 0x18a   : > { %4132 = vmatprep.mubr.msk.bf16.mxu0 %vm4543_vm1, %v4542_v3 }
 0x245   : > { %v1273_v31 = vpop.f32.mrf.mxu1 }
 0x246   : > { %v1274_v32 = vadd.f32 %v1273_v31, %v4872_v29 }
 0x247   : > { %v4116_v34 = vpop.f32.mrf.mxu1 }
 0x248   : > { %v1328_v35 = vsel %vm1232_vm3, %v1274_v32, -inf }
 0x249   : > { %v1322_v36 = vpop.f32.mrf.mxu0  ;;  %1329 = vmax.xlane.f32.xlu1 %v1328_v35  ;;  %v1276_v37 = vpop.f32.mrf.mxu1 }
 0x24a   : > { %v1323_v38 = vadd.f32 %v1322_v36, %v4875_v33 }
 0x24b   : > { %v4117_v39 = vpop.f32.mrf.mxu1  ;;  %v4122_v40 = vpop.f32.mrf.mxu0 }
 0x24c   : > { %v1331_v41 = vsel %vm1232_vm3, %v1323_v38, -inf }
 0x24d   : > { %v1325_v42 = vpop.f32.mrf.mxu0  ;;  %1332 = vmax.xlane.f32.xlu1 %v1331_v41 }
 0x24f   : > { %v4123_v43 = vpop.f32.mrf.mxu0 }
 0x25e   : > { %1352 = vrot.lane.b32.xlu1 %v4839_v12, %s4545_s14 }
 0x262   : > { %1401 = vrot.lane.b32.xlu1 %v4843_v16, %s4545_s14  ;;  %s5372_s14 = smov 16  }
 0x266   : > { %1452 = vrot.lane.b32.xlu1 %v4839_v12, %s4546_s8 }
 0x2d2   : > { %v1330_v44 = vpop.xlane.xlu1 %1329 }
 0x2d3   : > { %v1334_v45 = vsub.f32 %v1274_v32, %v1330_v44 }
 0x2d5   : > { %v1336_v46 = vmul.f32 1.442695, %v1334_v45 }
 0x2d6   : > { %v1333_v47 = vpop.xlane.xlu1 %1332 }
 0x2d7   : > { %4442 = vpow2.f32 %v1336_v46  ;;  %v1335_v48 = vsub.f32 %v1323_v38, %v1333_v47 }
 0x2d9   : > { %v1338_v49 = vmul.f32 1.442695, %v1335_v48 }
 0x2da   : > { %v1353_v50 = vpop.permute.xlu1 %1352 }
 0x2db   : > { %4444 = vpow2.f32 %v1338_v49  ;;  %v1359_v51 = vsel %vm1357_vm4, %v1353_v50, 0 }
 0x2dc   : > { %4125 = vmatpush3.bf16.msra.mxu1 %v1359_v51 }
 0x2dd   : > { %4136 = vmatprep.subr.bf16.mxu1 %v4542_v3 }
 0x2de   : > { %v1402_v52 = vpop.permute.xlu1 %1401 }
 0x2df   : > { %v1407_v53 = vsel %vm1357_vm4, %v1402_v52, 0 }
 0x2e0   : > { %4131 = vmatpush3.bf16.msra.mxu0 %v1407_v53 }
 0x2e1   : > { %4142 = vmatprep.subr.bf16.mxu0 %v4542_v3 }
 0x2e2   : > { %v1453_v58 = vpop.permute.xlu1 %1452 }
 0x2e3   : > { %v1458_v1 = vsel %vm1232_vm3, %v1453_v58, 0 }
 0x2e4   : > { %v4443_v54 = vpop.eup %4442 }
 0x2e5   : > { %v1340_v55 = vsel %vm1232_vm3, %v4443_v54, 0.0 }
 0x2e6   : > { %1341 = vadd.xlane.f32.xlu0 %v1340_v55 }
 0x2e8   : > { %v4445_v56 = vpop.eup %4444 }
 0x2e9   : > { %v1343_v57 = vsel %vm1232_vm3, %v4445_v56, 0.0 }
 0x2ea   : > { %1344 = vadd.xlane.f32.xlu1 %v1343_v57 }
 0x2fb   : > { %1503 = vrot.lane.b32.xlu1 %v4843_v16, %s4546_s8 }
 0x2fc   : > { %1450 = vrot.lane.b32.xlu0 %v4850_v22, %s4547_s24 }
 0x2ff   : > { %1501 = vrot.lane.b32.xlu1 %v4857_v24, %s4547_s24 }
 0x36f   : > { %v1342_v59 = vpop.xlane.xlu0 %1341 }
 0x370   : > { %4446 = vrcp.f32 %v1342_v59 }
 0x373   : > { %v1345_v60 = vpop.xlane.xlu1 %1344  ;;  %v1451_v9 = vpop.permute.xlu0 %1450 }
 0x374   : > { %4448 = vrcp.f32 %v1345_v60 }
 0x377   : > { %v1504_v4 = vpop.permute.xlu1 %1503 }
 0x378   : > { %v1509_v8 = vsel %vm1232_vm3, %v1504_v4, 0 }
 0x37b   : > { %v1502_v10 = vpop.permute.xlu1 %1501 }
 0x37d   : > { %v4447_v61 = vpop.eup %4446 }
 0x37e   : > { %v1348_v62 = vmul.f32 %v4447_v61, %v4443_v54 }
 0x380   : > { %v1350_v63 = vpack.c.bf16 %v1348_v62, %v1348_v62 }
 0x381   : > { %v4449_v0 = vpop.eup %4448 }
 0x382   : > { %4127 = vmatmul.mubr.msk.bf16.vlgmr.msra.gmra.mxu1 %vm1232_vm3, %v1350_v63  ;;  %v1349_v2 = vmul.f32 %v4449_v0, %v4445_v56 }
 0x383   : > { %4137 = vmatpush3.bf16.xpose.msra.mxu1 %v1458_v1  ;;  %4138 = vmatprep.mubr.msk.bf16.mxu1 %vm4543_vm1, %v4542_v3 }
 0x384   : > { %v1351_v7 = vpack.c.bf16 %v1349_v2, %v1349_v2  ;;  %4148 = vmatprep.subr.bf16.mxu1 %v4542_v3 }
 0x386   : > { %4133 = vmatmul.mubr.msk.bf16.vlgmr.msra.gmra.mxu0 %vm1232_vm3, %v1351_v7 }
 0x387   : > { %4143 = vmatpush3.bf16.xpose.msra.mxu0 %v1509_v8  ;;  %4144 = vmatprep.mubr.msk.bf16.mxu0 %vm4543_vm1, %v4542_v3 }
 0x388   : > { %4154 = vmatprep.subr.bf16.mxu0 %v4542_v3 }
 0x38a   : > { %4139 = vmatmul.mubr.msk.bf16.vlgmr.msra.gmra.mxu1 %vm1232_vm3, %v1451_v9 }
 0x38b   : > { %4150 = vmatprep.mubr.msk.bf16.mxu1 %vm4543_vm1, %v4542_v3 }
 0x38e   : > { %4145 = vmatmul.mubr.msk.bf16.vlgmr.msra.gmra.mxu0 %vm1232_vm3, %v1502_v10 }
 0x38f   : > { %4156 = vmatprep.mubr.msk.bf16.mxu0 %vm4543_vm1, %v4542_v3 }
 0x442   : > { %v4912_v11 = vpop.f32.mrf.mxu1 }
 0x444   : > { %v4128_v13 = vpop.f32.mrf.mxu1 }
 0x446   : > { %v1398_v14 = vpop.f32.mrf.mxu1  ;;  %v4914_v15 = vpop.f32.mrf.mxu0 }
 0x448   : > { %v4129_v17 = vpop.f32.mrf.mxu1  ;;  %v4134_v18 = vpop.f32.mrf.mxu0 }
 0x44a   : > { %v1446_v19 = vpop.f32.mrf.mxu0  ;;  %v1494_v20 = vpop.f32.mrf.mxu1 }
 0x44b   : > { %v1495_v21 = vadd.f32 %v1494_v20, %v4872_v29 }
 0x44c   : > { %v4135_v23 = vpop.f32.mrf.mxu0  ;;  %v4140_v25 = vpop.f32.mrf.mxu1 }
 0x44d   : > { %v1551_v26 = vsel %vm1232_vm3, %v1495_v21, -inf }
 0x44e   : > { %v1545_v27 = vpop.f32.mrf.mxu0  ;;  %1552 = vmax.xlane.f32.xlu1 %v1551_v26  ;;  %v1497_v28 = vpop.f32.mrf.mxu1 }
 0x44f   : > { %v1546_v30 = vadd.f32 %v1545_v27, %v4875_v33 }
 0x450   : > { %v4141_v31 = vpop.f32.mrf.mxu1  ;;  %v4146_v32 = vpop.f32.mrf.mxu0 }
 0x451   : > { %v1554_v34 = vsel %vm1232_vm3, %v1546_v30, -inf }
 0x452   : > { %1555 = vmax.xlane.f32.xlu0 %v1554_v34  ;;  %v1548_v35 = vpop.f32.mrf.mxu0 }
 0x454   : > { %v4147_v36 = vpop.f32.mrf.mxu0 }
 0x45f   : > { %1575 = vrot.lane.b32.xlu1 %v4839_v12, %s4548_s10 }
 0x463   : > { %1673 = vrot.lane.b32.xlu1 %v4839_v12, %s4549_s17 }
 0x468   : > { %1623 = vrot.lane.b32.xlu0 %v4843_v16, %s4548_s10  ;;  %s5371_s10 = smov 24  }
 0x46c   : > { %1671 = vrot.lane.b32.xlu0 %v4850_v22, %s4550_s1 }
 0x4d7   : > { %v1553_v37 = vpop.xlane.xlu1 %1552 }
 0x4d8   : > { %v1557_v38 = vsub.f32 %v1495_v21, %v1553_v37 }
 0x4da   : > { %v1559_v39 = vmul.f32 1.442695, %v1557_v38 }
 0x4db   : > { %v1556_v40 = vpop.xlane.xlu0 %1555  ;;  %v1576_v41 = vpop.permute.xlu1 %1575 }
 0x4dc   : > { %4450 = vpow2.f32 %v1559_v39  ;;  %v1558_v42 = vsub.f32 %v1546_v30, %v1556_v40  ;;  %v1581_v43 = vsel %vm1357_vm4, %v1576_v41, 0 }
 0x4dd   : > { %4149 = vmatpush3.bf16.msra.mxu1 %v1581_v43 }
 0x4de   : > { %v1561_v44 = vmul.f32 1.442695, %v1558_v42  ;;  %4160 = vmatprep.subr.bf16.mxu1 %v4542_v3 }
 0x4df   : > { %v1624_v45 = vpop.permute.xlu0 %1623  ;;  %v1674_v51 = vpop.permute.xlu1 %1673 }
 0x4e0   : > { %4452 = vpow2.f32 %v1561_v44  ;;  %v1629_v46 = vsel %vm1357_vm4, %v1624_v45, 0  ;;  %v1679_v58 = vsel %vm1232_vm3, %v1674_v51, 0 }
 0x4e1   : > { %4155 = vmatpush3.bf16.msra.mxu0 %v1629_v46 }
 0x4e2   : > { %4166 = vmatprep.subr.bf16.mxu0 %v4542_v3 }
 0x4e3   : > { %v1672_v63 = vpop.permute.xlu0 %1671 }
 0x4e9   : > { %v4451_v47 = vpop.eup %4450 }
 0x4ea   : > { %v1563_v48 = vsel %vm1232_vm3, %v4451_v47, 0.0 }
 0x4eb   : > { %1564 = vadd.xlane.f32.xlu1 %v1563_v48 }
 0x4ed   : > { %v4453_v49 = vpop.eup %4452 }
 0x4ee   : > { %v1566_v50 = vsel %vm1232_vm3, %v4453_v49, 0.0 }
 0x4ef   : > { %1567 = vadd.xlane.f32.xlu1 %v1566_v50 }
 0x500   : > { %1723 = vrot.lane.b32.xlu1 %v4843_v16, %s4549_s17 }
 0x504   : > { %1721 = vrot.lane.b32.xlu1 %v4857_v24, %s4550_s1 }
 0x574   : > { %v1565_v52 = vpop.xlane.xlu1 %1564 }
 0x575   : > { %4454 = vrcp.f32 %v1565_v52 }
 0x578   : > { %v1568_v53 = vpop.xlane.xlu1 %1567 }
 0x579   : > { %4456 = vrcp.f32 %v1568_v53 }
 0x57c   : > { %v1724_v60 = vpop.permute.xlu1 %1723 }
 0x57d   : > { %v1729_v62 = vsel %vm1232_vm3, %v1724_v60, 0 }
 0x580   : > { %v1722_v0 = vpop.permute.xlu1 %1721 }
 0x582   : > { %v4455_v54 = vpop.eup %4454 }
 0x583   : > { %v1571_v55 = vmul.f32 %v4455_v54, %v4451_v47 }
 0x585   : > { %v1573_v56 = vpack.c.bf16 %v1571_v55, %v1571_v55 }
 0x586   : > { %v4457_v57 = vpop.eup %4456 }
 0x587   : > { %4151 = vmatmul.mubr.msk.bf16.vlgmr.msra.gmra.mxu1 %vm1232_vm3, %v1573_v56  ;;  %v1572_v59 = vmul.f32 %v4457_v57, %v4453_v49 }
 0x588   : > { %4161 = vmatpush3.bf16.xpose.msra.mxu1 %v1679_v58  ;;  %4162 = vmatprep.mubr.msk.bf16.mxu1 %vm4543_vm1, %v4542_v3 }
 0x589   : > { %v1574_v61 = vpack.c.bf16 %v1572_v59, %v1572_v59  ;;  %4172 = vmatprep.subr.bf16.mxu1 %v4542_v3 }
 0x58b   : > { %4157 = vmatmul.mubr.msk.bf16.vlgmr.msra.gmra.mxu0 %vm1232_vm3, %v1574_v61 }
 0x58c   : > { %4167 = vmatpush3.bf16.xpose.msra.mxu0 %v1729_v62  ;;  %4168 = vmatprep.mubr.msk.bf16.mxu0 %vm4543_vm1, %v4542_v3 }
 0x58d   : > { %4178 = vmatprep.subr.bf16.mxu0 %v4542_v3 }
 0x58f   : > { %4163 = vmatmul.mubr.msk.bf16.vlgmr.msra.gmra.mxu1 %vm1232_vm3, %v1672_v63 }
 0x590   : > { %4174 = vmatprep.mubr.msk.bf16.mxu1 %vm4543_vm1, %v4542_v3 }
 0x593   : > { %4169 = vmatmul.mubr.msk.bf16.vlgmr.msra.gmra.mxu0 %vm1232_vm3, %v1722_v0 }
 0x594   : > { %4180 = vmatprep.mubr.msk.bf16.mxu0 %vm4543_vm1, %v4542_v3 }
 0x647   : > { %v4952_v1 = vpop.f32.mrf.mxu1 }
 0x649   : > { %v4152_v2 = vpop.f32.mrf.mxu1 }
 0x64b   : > { %v1620_v4 = vpop.f32.mrf.mxu1  ;;  %v4954_v7 = vpop.f32.mrf.mxu0 }
 0x64c   : > { %v4396_v8 = vpack.i.bf16 %v4954_v7, %v4952_v1 }
 0x64d   : > { %v4153_v9 = vpop.f32.mrf.mxu1  ;;  %v4158_v10 = vpop.f32.mrf.mxu0 }
 0x64f   : > { %v1668_v13 = vpop.f32.mrf.mxu0  ;;  %v1715_v14 = vpop.f32.mrf.mxu1 }
 0x650   : > { %v1716_v17 = vadd.f32 %v1715_v14, %v4872_v29 }
 0x651   : > { %v4159_v18 = vpop.f32.mrf.mxu0  ;;  %v4164_v19 = vpop.f32.mrf.mxu1 }
 0x652   : > { %v1771_v20 = vsel %vm1232_vm3, %v1716_v17, -inf }
 0x653   : > { %v1765_v21 = vpop.f32.mrf.mxu0  ;;  %1772 = vmax.xlane.f32.xlu0 %v1771_v20  ;;  %v1718_v23 = vpop.f32.mrf.mxu1 }
 0x654   : > { %v1766_v25 = vadd.f32 %v1765_v21, %v4875_v33 }
 0x655   : > { %v4165_v26 = vpop.f32.mrf.mxu1  ;;  %v4170_v27 = vpop.f32.mrf.mxu0 }
 0x656   : > { %v1774_v28 = vsel %vm1232_vm3, %v1766_v25, -inf }
 0x657   : > { %1775 = vmax.xlane.f32.xlu1 %v1774_v28  ;;  %v1768_v30 = vpop.f32.mrf.mxu0 }
 0x659   : > { %v4171_v31 = vpop.f32.mrf.mxu0 }
 0x668   : > { %1795 = vrot.lane.b32.xlu1 %v4839_v12, %s4551_s18 }
 0x66c   : > { %1893 = vrot.lane.b32.xlu1 %v4839_v12, %s4552_s30 }
 0x670   : > { %1943 = vrot.lane.b32.xlu1 %v4843_v16, %s4552_s30 }
 0x674   : > { %1941 = vrot.lane.b32.xlu1 %v4857_v24, %s4553_s5 }
 0x6dc   : > { %v1773_v32 = vpop.xlane.xlu0 %1772 }
 0x6dd   : > { %v1777_v34 = vsub.f32 %v1716_v17, %v1773_v32 }
 0x6df   : > { %v1779_v35 = vmul.f32 1.442695, %v1777_v34 }
 0x6e0   : > { %v1776_v36 = vpop.xlane.xlu1 %1775 }
 0x6e1   : > { %4458 = vpow2.f32 %v1779_v35  ;;  %v1778_v37 = vsub.f32 %v1766_v25, %v1776_v36 }
 0x6e3   : > { %v1781_v38 = vmul.f32 1.442695, %v1778_v37 }
 0x6e4   : > { %v1796_v39 = vpop.permute.xlu1 %1795 }
 0x6e5   : > { %4460 = vpow2.f32 %v1781_v38  ;;  %v1801_v40 = vsel %vm1357_vm4, %v1796_v39, 0 }
 0x6e6   : > { %4173 = vmatpush3.bf16.msra.mxu1 %v1801_v40 }
 0x6e7   : > { %4184 = vmatprep.subr.bf16.mxu1 %v4542_v3 }
 0x6e8   : > { %v1894_v49 = vpop.permute.xlu1 %1893 }
 0x6e9   : > { %v1899_v53 = vsel %vm1232_vm3, %v1894_v49, 0 }
 0x6ec   : > { %v1944_v54 = vpop.permute.xlu1 %1943 }
 0x6ed   : > { %v1949_v56 = vsel %vm1232_vm3, %v1944_v54, 0 }
 0x6ee   : > { %v4459_v41 = vpop.eup %4458 }
 0x6ef   : > { %v1783_v42 = vsel %vm1232_vm3, %v4459_v41, 0.0 }
 0x6f0   : > { %1784 = vadd.xlane.f32.xlu0 %v1783_v42  ;;  %v1942_v58 = vpop.permute.xlu1 %1941 }
 0x6f2   : > { %v4461_v43 = vpop.eup %4460 }
 0x6f3   : > { %v1786_v24 = vsel %vm1232_vm3, %v4461_v43, 0.0 }
 0x6f4   : > { %1787 = vadd.xlane.f32.xlu0 %v1786_v24 }
 0x70a   : > { %1843 = vrot.lane.b32.xlu0 %v4843_v16, %s4551_s18  ;;  %s5424_s18 = sld [smem:[#allocation8_spill]] }
 0x70e   : > { %1891 = vrot.lane.b32.xlu0 %v4850_v22, %s4553_s5 }
 0x779   : > { %v1785_v44 = vpop.xlane.xlu0 %1784 }
 0x77a   : > { %4462 = vrcp.f32 %v1785_v44  ;;  %v4428_v44 = vld [vmem:[%s4720_s27 + $0x8] sm:$0xff]  }
 0x77d   : > { %v1788_v45 = vpop.xlane.xlu0 %1787 }
 0x77e   : > { %4464 = vrcp.f32 %v1788_v45  ;;  %v4429_v45 = vld [vmem:[%s4720_s27] sm:$0xff]  }
 0x781   : > { %v1844_v46 = vpop.permute.xlu0 %1843 }
 0x782   : > { %v1849_v47 = vsel %vm1357_vm4, %v1844_v46, 0 }
 0x783   : > { %4179 = vmatpush3.bf16.msra.mxu0 %v1849_v47 }
 0x784   : > { %4190 = vmatprep.subr.bf16.mxu0 %v4542_v3 }
 0x785   : > { %v1892_v57 = vpop.permute.xlu0 %1891 }
 0x787   : > { %v4463_v48 = vpop.eup %4462 }
 0x788   : > { %v1791_v50 = vmul.f32 %v4463_v48, %v4459_v41 }
 0x78a   : > { %v1793_v51 = vpack.c.bf16 %v1791_v50, %v1791_v50 }
 0x78b   : > { %v4465_v52 = vpop.eup %4464 }
 0x78c   : > { %4175 = vmatmul.mubr.msk.bf16.vlgmr.msra.gmra.mxu1 %vm1232_vm3, %v1793_v51  ;;  %v1792_v22 = vmul.f32 %v4465_v52, %v4461_v43 }
 0x78d   : > { %4185 = vmatpush3.bf16.xpose.msra.mxu1 %v1899_v53  ;;  %4186 = vmatprep.mubr.msk.bf16.mxu1 %vm4543_vm1, %v4542_v3 }
 0x78e   : > { %v1794_v55 = vpack.c.bf16 %v1792_v22, %v1792_v22  ;;  %4196 = vmatprep.subr.bf16.mxu1 %v4542_v3 }
 0x790   : > { %4181 = vmatmul.mubr.msk.bf16.vlgmr.msra.gmra.mxu0 %vm1232_vm3, %v1794_v55 }
 0x791   : > { %4191 = vmatpush3.bf16.xpose.msra.mxu0 %v1949_v56  ;;  %4192 = vmatprep.mubr.msk.bf16.mxu0 %vm4543_vm1, %v4542_v3 }
 0x792   : > { %4202 = vmatprep.subr.bf16.mxu0 %v4542_v3 }
 0x794   : > { %4187 = vmatmul.mubr.msk.bf16.vlgmr.msra.gmra.mxu1 %vm1232_vm3, %v1892_v57 }
 0x795   : > { %4198 = vmatprep.mubr.msk.bf16.mxu1 %vm4543_vm1, %v4542_v3 }
 0x798   : > { %4193 = vmatmul.mubr.msk.bf16.vlgmr.msra.gmra.mxu0 %vm1232_vm3, %v1942_v58 }
 0x799   : > { %4204 = vmatprep.mubr.msk.bf16.mxu0 %vm4543_vm1, %v4542_v3 }
 0x84c   : > { %v1837_v59 = vpop.f32.mrf.mxu1 }
 0x84e   : > { %v4176_v60 = vpop.f32.mrf.mxu1 }
 0x850   : > { %v1840_v61 = vpop.f32.mrf.mxu1  ;;  %v1885_v62 = vpop.f32.mrf.mxu0 }
 0x852   : > { %v4177_v63 = vpop.f32.mrf.mxu1  ;;  %v4182_v0 = vpop.f32.mrf.mxu0 }
 0x854   : > { %v1888_v2 = vpop.f32.mrf.mxu0  ;;  %v1935_v4 = vpop.f32.mrf.mxu1 }
 0x855   : > { %v1936_v9 = vadd.f32 %v1935_v4, %v4872_v29  ;;  %v4401_v29 = vpack.i.bf16 %v1885_v62, %v1837_v59 }
 0x856   : > { %v4183_v10 = vpop.f32.mrf.mxu0  ;;  %v4188_v13 = vpop.f32.mrf.mxu1 }
 0x857   : > { %v1991_v14 = vsel %vm1232_vm3, %v1936_v9, -inf }
 0x858   : > { %v1985_v17 = vpop.f32.mrf.mxu0  ;;  %1992 = vmax.xlane.f32.xlu0 %v1991_v14  ;;  %v1938_v18 = vpop.f32.mrf.mxu1 }
 0x859   : > { %v1986_v19 = vadd.f32 %v1985_v17, %v4875_v33 }
 0x85a   : > { %v4189_v20 = vpop.f32.mrf.mxu1  ;;  %v4194_v21 = vpop.f32.mrf.mxu0 }
 0x85b   : > { %v1994_v23 = vsel %vm1232_vm3, %v1986_v19, -inf }
 0x85c   : > { %1995 = vmax.xlane.f32.xlu1 %v1994_v23  ;;  %v1988_v25 = vpop.f32.mrf.mxu0 }
 0x85e   : > { %v4195_v26 = vpop.f32.mrf.mxu0 }
 0x86d   : > { %2015 = vrot.lane.b32.xlu1 %v4839_v12, %s4554_s25 }
 0x871   : > { %4397 = vrot.lane.b32.xlu1 %v4396_v8, %s5373_s3 }
 0x875   : > { %4402 = vrot.lane.b32.xlu1 %v4401_v29, %s5372_s14 }
 0x8e1   : > { %v1993_v33 = vpop.xlane.xlu0 %1992 }
 0x8e2   : > { %v1997_v27 = vsub.f32 %v1936_v9, %v1993_v33 }
 0x8e4   : > { %v1999_v28 = vmul.f32 1.442695, %v1997_v27 }
 0x8e5   : > { %v1996_v30 = vpop.xlane.xlu1 %1995 }
 0x8e6   : > { %4466 = vpow2.f32 %v1999_v28  ;;  %v1998_v31 = vsub.f32 %v1986_v19, %v1996_v30 }
 0x8e8   : > { %v2001_v32 = vmul.f32 1.442695, %v1998_v31 }
 0x8e9   : > { %v2016_v34 = vpop.permute.xlu1 %2015 }
 0x8ea   : > { %4468 = vpow2.f32 %v2001_v32  ;;  %v2021_v12 = vsel %vm1357_vm4, %v2016_v34, 0 }
 0x8eb   : > { %4197 = vmatpush3.bf16.msra.mxu1 %v2021_v12 }
 0x8ec   : > { %4208 = vmatprep.subr.bf16.mxu1 %v4542_v3 }
 0x8ed   : > { %v4398_v54 = vpop.permute.xlu1 %4397 }
 0x8ee   : > { %v4400_v56 = vunpack.i.h.bf16 %v4398_v54  ;;  %v4399_v57 = vunpack.i.l.bf16 %v4398_v54 }
 0x8f0   : > { %v2136_v61 = vsel %vm1232_vm3, %v4914_v15, %v4400_v56  ;;  %v2135_v62 = vsel %vm1232_vm3, %v4912_v11, %v4399_v57 }
 0x8f1   : > { %v4403_v55 = vpop.permute.xlu1 %4402 }
 0x8f2   : > { %v4405_v58 = vunpack.i.h.bf16 %v4403_v55  ;;  %v4404_v59 = vunpack.i.l.bf16 %v4403_v55 }
 0x8f3   : > { %v4467_v1 = vpop.eup %4466 }
 0x8f4   : > { %v2003_v7 = vsel %vm1232_vm3, %v4467_v1, 0.0  ;;  %v2139_v2 = vsel %vm2137_vm5, %v2136_v61, %v4405_v58  ;;  %v2138_v4 = vsel %vm2137_vm5, %v2135_v62, %v4404_v59 }
 0x8f5   : > { %2004 = vadd.xlane.f32.xlu0 %v2003_v7  ;;  %v1131_v7 = vld [vmem:[%s5424_s18] sm:$0xff] }
 0x8f7   : > { %v4469_v8 = vpop.eup %4468 }
 0x8f8   : > { %v2006_v35 = vsel %vm1232_vm3, %v4469_v8, 0.0 }
 0x8f9   : > { %2007 = vadd.xlane.f32.xlu0 %v2006_v35 }
 0x90f   : > { %2063 = vrot.lane.b32.xlu0 %v4843_v16, %s4554_s25  ;;  %s5422_s25 = sld [smem:[#allocation14_spill]] }
 0x915   : > { %s5423_s16 = scalar_lea.vmem %s5422_s25, %s4705_s6  ;;  %s5428_s25 = scalar_lea.vmem %s5350_s13, %s4705_s6 }
 0x916   : > { %v3956_v15 = vld [vmem:[%s5423_s16] ss:$0 sm:$0xff] }
 0x917   : > { %v3966_v56 = vld [vmem:[%s5428_s25] ss:$0 sm:$0xff] }
 0x97e   : > { %v2005_v36 = vpop.xlane.xlu0 %2004 }
 0x97f   : > { %4470 = vrcp.f32 %v2005_v36  ;;  %v1133_v36 = vld [vmem:[%s5424_s18 + $0x10] sm:$0xff] }
 0x982   : > { %v2008_v37 = vpop.xlane.xlu0 %2007 }
 0x983   : > { %4472 = vrcp.f32 %v2008_v37  ;;  %v1134_v37 = vld [vmem:[%s5424_s18 + $0x18] sm:$0xff] }
 0x986   : > { %v2064_v38 = vpop.permute.xlu0 %2063 }
 0x987   : > { %v2069_v39 = vsel %vm1357_vm4, %v2064_v38, 0  ;;  %v2331_v38 = vpack.c.bf16 %v1134_v37, %v1133_v36 }
 0x988   : > { %4203 = vmatpush3.bf16.msra.mxu0 %v2069_v39  ;;  %v4432_v39 = vld [vmem:[%s4737_s26 + $0x8] sm:$0xff]  }
 0x989   : > { %4216 = vmatprep.subr.bf16.mxu0 %v4542_v3 }
 0x98c   : > { %v4471_v40 = vpop.eup %4470 }
 0x98d   : > { %v2011_v41 = vmul.f32 %v4471_v40, %v4467_v1  ;;  %v4430_v1 = vld [vmem:[%s4746_s21 + $0x8] sm:$0xff]   ;;  %v4433_v40 = vld [vmem:[%s4737_s26] sm:$0xff]   ;;  %s5425_s26 = sld [smem:[#allocation15_spill]] }
 0x98f   : > { %v2013_v42 = vpack.c.bf16 %v2011_v41, %v2011_v41 }
 0x990   : > { %v4473_v43 = vpop.eup %4472 }
 0x991   : > { %4199 = vmatmul.mubr.msk.bf16.vlgmr.msra.gmra.mxu1 %vm1232_vm3, %v2013_v42  ;;  %v2012_v24 = vmul.f32 %v4473_v43, %v4469_v8  ;;  %v1132_v8 = vld [vmem:[%s5424_s18 + $0x8] sm:$0xff] }
 0x992   : > { %4212 = vmatprep.mubr.msk.bf16.mxu1 %vm4543_vm1, %v4542_v3  ;;  %4209 = vmatpush3.bf16.msra.mxu1 %v4428_v44  ;;  %v2330_v35 = vpack.c.bf16 %v1132_v8, %v1131_v7 }
 0x993   : > { %v2014_v16 = vpack.c.bf16 %v2012_v24, %v2012_v24  ;;  %4210 = vmatprep.subr.bf16.mxu1 %v4542_v3  ;;  %s5426_s12 = scalar_lea.vmem %s5425_s26, %s4705_s6  ;;  %s5429_s26 = scalar_lea.vmem %s5348_s11, %s4705_s6 }
 0x995   : > { %4205 = vmatmul.mubr.msk.bf16.vlgmr.msra.gmra.mxu0 %vm1232_vm3, %v2014_v16 }
 0x996   : > { %4220 = vmatprep.mubr.msk.bf16.mxu0 %vm4543_vm1, %v4542_v3  ;;  %4211 = vmatpush3.bf16.msra.mxu1 %v4429_v45 }
 0x997   : > { %4224 = vmatprep.subr.bf16.mxu1 %v4430_v1  ;;  %4217 = vmatpush3.bf16.msra.mxu0 %v4432_v39 }
 0x998   : > { %4218 = vmatprep.subr.bf16.mxu0 %v4542_v3 }
 0x99b   : > { %4219 = vmatpush3.bf16.msra.mxu0 %v4433_v40 }
 0x99c   : > { %4232 = vmatprep.subr.bf16.mxu0 %v4542_v3 }
 0xa51   : > { %v2057_v46 = vpop.f32.mrf.mxu1 }
 0xa53   : > { %v4200_v47 = vpop.f32.mrf.mxu1 }
 0xa54   : > { %v3960_v47 = vld [vmem:[%s5426_s12] ss:$0 sm:$0xff] }
 0xa55   : > { %v2060_v48 = vpop.f32.mrf.mxu1  ;;  %v2105_v49 = vpop.f32.mrf.mxu0 }
 0xa56   : > { %v4406_v50 = vpack.i.bf16 %v2105_v49, %v2057_v46 }
 0xa57   : > { %v4201_v51 = vpop.f32.mrf.mxu1  ;;  %v4206_v52 = vpop.f32.mrf.mxu0 }
 0xa58   : > { %4407 = vrot.lane.b32.xlu0 %v4406_v50, %s5371_s10  ;;  %s5427_s10 = scalar_lea.vmem %s5346_s9, %s4705_s6 }
 0xa59   : > { %v2108_v53 = vpop.f32.mrf.mxu0  ;;  %v3961_v51 = vld [vmem:[%s5427_s10] ss:$0 sm:$0xff]  ;;  %s5436_s10 = sld [smem:[#allocation20_spill]] }
 0xa5b   : > { %v4207_v22 = vpop.f32.mrf.mxu0 }
 0xa5f   : > { %s5437_s16 = scalar_lea.vmem %s5436_s10, %s4705_s6 }
 0xaca   : > { %v4408_v60 = vpop.permute.xlu0 %4407 }
 0xacb   : > { %v4410_v63 = vunpack.i.h.bf16 %v4408_v60  ;;  %v4409_v0 = vunpack.i.l.bf16 %v4408_v60 }
 0xacd   : > { %v2142_v9 = vsel %vm2140_vm6, %v2139_v2, %v4410_v63  ;;  %v2141_v10 = vsel %vm2140_vm6, %v2138_v4, %v4409_v0 }
 0xace   : > { %v2143_v13 = vpack.c.bf16 %v2142_v9, %v2141_v10  ;;  %v3962_v10 = vld [vmem:[%s5429_s26] ss:$0 sm:$0xff] }
 0xad0   : > { %4213 = vmatmul.mubr.msk.bf16.vlgmr.msra.gmra.mxu1 %vm1178_vm2, %v2143_v13 }
 0xad1   : > { %4225 = vmatpush3.bf16.msra.mxu1 %v4430_v1  ;;  %4228 = vmatprep.mubr.msk.bf16.mxu1 %vm1178_vm2, %v2330_v35 }
 0xb90   : > { %v2204_v14 = vpop.f32.mrf.mxu1 }
 0xb91   : > { %v2205_v11 = vadd.f32 %v3956_v15, %v2204_v14 }
 0xb92   : > { %v4214_v17 = vpop.f32.mrf.mxu1 }
 0xb93   : > { %v2213_v18 = vadd.f32 %v2205_v11, %v4818_v5 }
 0xb94   : > { %v2207_v19 = vpop.f32.mrf.mxu1 }
 0xb95   : > { %v2208_v20 = vadd.f32 %v3956_v15, %v2207_v19  ;;  %v2215_v21 = vsel %vm1178_vm2, %v2213_v18, 0.0 }
 0xb96   : > { %2216 = vadd.xlane.f32.xlu1 %v2215_v21  ;;  %v4215_v23 = vpop.f32.mrf.mxu1 }
 0xb97   : > { %v2214_v25 = vadd.f32 %v2208_v20, %v4823_v6  ;;  %v4431_v6 = vld [vmem:[%s4746_s21] sm:$0xff]   ;;  %s5438_s21 = scalar_lea.vmem %s5356_s19, %s4705_s6 }
 0xb98   : > { %4226 = vmatprep.subr.bf16.mxu1 %v4431_v6 }
 0xb99   : > { %v2218_v26 = vsel %vm1178_vm2, %v2214_v25, 0.0  ;;  %4227 = vmatpush3.bf16.msra.mxu1 %v4431_v6 }
 0xb9a   : > { %2219 = vadd.xlane.f32.xlu0 %v2218_v26  ;;  %4238 = vmatprep.subr.bf16.mxu1 %v4542_v3 }
 0xb9c   : > { %4229 = vmatmul.mubr.msk.bf16.vlgmr.msra.gmra.mxu1 %vm1178_vm2, %v2331_v38 }
 0xb9d   : > { %4240 = vmatprep.mubr.msk.bf16.mxu1 %vm4543_vm1, %v4542_v3 }
 0xc1f   : > { %v2217_v29 = vpop.xlane.xlu1 %2216 }
 0xc20   : > { %v2222_v33 = vmul.f32 0.03125, %v2217_v29 }
 0xc22   : > { %v2224_v27 = vsub.f32 %v2213_v18, %v2222_v33 }
 0xc23   : > { %v2220_v28 = vpop.xlane.xlu0 %2219 }
 0xc24   : > { %v2223_v30 = vmul.f32 0.03125, %v2220_v28  ;;  %v2226_v31 = vmul.f32 %v2224_v27, %v2224_v27 }
 0xc26   : > { %v2225_v5 = vsub.f32 %v2214_v25, %v2223_v30  ;;  %v2228_v32 = vsel %vm1178_vm2, %v2226_v31, 0.0 }
 0xc27   : > { %2229 = vadd.xlane.f32.xlu0 %v2228_v32 }
 0xc28   : > { %v2227_v34 = vmul.f32 %v2225_v5, %v2225_v5 }
 0xc2a   : > { %v2231_v12 = vsel %vm1178_vm2, %v2227_v34, 0.0 }
 0xc2b   : > { %2232 = vadd.xlane.f32.xlu1 %v2231_v12 }
 0xc5c   : > { %v4230_v55 = vpop.f32.mrf.mxu1 }
 0xc5d   : > { %v2404_v58 = vadd.f32 %v4230_v55, %v3966_v56 }
 0xc5e   : > { %v2395_v57 = vpop.f32.mrf.mxu1 }
 0xc5f   : > { %v2396_v60 = vadd.f32 %v3966_v56, %v2395_v57 }
 0xc60   : > { %v4231_v59 = vpop.f32.mrf.mxu1 }
 0xc61   : > { %v2407_v61 = vadd.f32 %v4231_v59, %v3966_v56 }
 0xc62   : > { %v2398_v62 = vpop.f32.mrf.mxu1 }
 0xc63   : > { %v5088_v63 = vpack.c.bf16 %v2407_v61, %v2404_v58  ;;  %v2399_v0 = vadd.f32 %v3966_v56, %v2398_v62 }
 0xc65   : > { %v5090_v2 = vpack.c.bf16 %v2399_v0, %v2396_v60  ;;  %v2462_v4 = vsel %vm1232_vm3, %v5088_v63, 0 }
 0xc66   : > { %4239 = vmatpush3.bf16.xpose.msra.mxu1 %v2462_v4 }
 0xc67   : > { %v2416_v9 = vsel %vm1232_vm3, %v5090_v2, 0  ;;  %4250 = vmatprep.subr.bf16.mxu1 %v4542_v3 }
 0xcb0   : > { %v2230_v41 = vpop.xlane.xlu0 %2229 }
 0xcb1   : > { %v2234_v42 = vmul.f32 0.03125, %v2230_v41 }
 0xcb3   : > { %v2236_v43 = vadd.f32 1e-05, %v2234_v42 }
 0xcb4   : > { %v2233_v24 = vpop.xlane.xlu1 %2232 }
 0xcb5   : > { %4474 = vrsqrt.f32 %v2236_v43  ;;  %v2235_v16 = vmul.f32 0.03125, %v2233_v24 }
 0xcb7   : > { %v2237_v44 = vadd.f32 1e-05, %v2235_v16 }
 0xcb9   : > { %4476 = vrsqrt.f32 %v2237_v44 }
 0xcc2   : > { %v4475_v45 = vpop.eup %4474 }
 0xcc3   : > { %v2240_v46 = vmul.f32 %v4475_v45, %v2224_v27 }
 0xcc5   : > { %v2248_v50 = vmul.f32 %v3960_v47, %v2240_v46 }
 0xcc6   : > { %v4477_v48 = vpop.eup %4476 }
 0xcc7   : > { %v2241_v49 = vmul.f32 %v4477_v48, %v2225_v5  ;;  %v5074_v53 = vadd.f32 %v3961_v51, %v2248_v50 }
 0xcc9   : > { %v2249_v52 = vmul.f32 %v3960_v47, %v2241_v49 }
 0xccb   : > { %v5076_v22 = vadd.f32 %v3961_v51, %v2249_v52 }
 0xccd   : > { %v2258_v54 = vpack.c.bf16 %v5076_v22, %v5074_v53 }
 0xccf   : > { %4221 = vmatmul.mubr.msk.bf16.vlgmr.msra.gmra.mxu0 %vm1178_vm2, %v2258_v54 }
 0xcd0   : > { %4234 = vmatprep.mubr.msk.bf16.mxu0 %vm4543_vm1, %v4542_v3  ;;  %4233 = vmatpush3.bf16.xpose.msra.mxu0 %v2416_v9 }
 0xcd1   : > { %4244 = vmatprep.subr.bf16.mxu0 %v4542_v3 }
 0xd8f   : > { %v2319_v13 = vpop.f32.mrf.mxu0 }
 0xd90   : > { %v2320_v15 = vadd.f32 %v3962_v10, %v2319_v13 }
 0xd91   : > { %v4222_v14 = vpop.f32.mrf.mxu0 }
 0xd92   : > { %v2326_v11 = vmul.f32 0.35355338, %v2320_v15 }
 0xd93   : > { %v2322_v17 = vpop.f32.mrf.mxu0 }
 0xd94   : > { %v5103_v18 = vpack.c.bf16 %v2326_v11, %v2326_v11  ;;  %v2323_v19 = vadd.f32 %v3962_v10, %v2322_v17 }
 0xd95   : > { %v4223_v20 = vpop.f32.mrf.mxu0 }
 0xd96   : > { %v2327_v21 = vmul.f32 0.35355338, %v2323_v19  ;;  %4235 = vmatmul.mubr.msk.bf16.vlgmr.msra.gmra.mxu0 %vm1232_vm3, %v5103_v18 }
 0xd97   : > { %4246 = vmatprep.mubr.msk.bf16.mxu0 %vm4543_vm1, %v4542_v3 }
 0xd98   : > { %v5109_v23 = vpack.c.bf16 %v2327_v21, %v2327_v21 }
 0xd9a   : > { %4241 = vmatmul.mubr.msk.bf16.vlgmr.msra.gmra.mxu1 %vm1232_vm3, %v5109_v23 }
 0xd9b   : > { %4252 = vmatprep.mubr.msk.bf16.mxu1 %vm4543_vm1, %v4542_v3 }
 0xe56   : > { %v2452_v25 = vpop.f32.mrf.mxu0 }
 0xe57   : > { %v2504_v26 = vsel %vm2137_vm5, %v2452_v25, -inf }
 0xe58   : > { %2505 = vmax.xlane.f32.xlu0 %v2504_v26  ;;  %v4236_v29 = vpop.f32.mrf.mxu0 }
 0xe5a   : > { %v2455_v33 = vpop.f32.mrf.mxu0  ;;  %v2498_v27 = vpop.f32.mrf.mxu1 }
 0xe5b   : > { %v2507_v28 = vsel %vm2137_vm5, %v2498_v27, -inf }
 0xe5c   : > { %2508 = vmax.xlane.f32.xlu1 %v2507_v28  ;;  %v4237_v30 = vpop.f32.mrf.mxu0  ;;  %v4242_v31 = vpop.f32.mrf.mxu1 }
 0xe5e   : > { %v2501_v5 = vpop.f32.mrf.mxu1 }
 0xe60   : > { %v4243_v32 = vpop.f32.mrf.mxu1 }
 0xe6d   : > { %2576 = vrot.lane.b32.xlu1 %v5088_v63, %s4544_s28 }
 0xe6e   : > { %2529 = vrot.lane.b32.xlu0 %v5090_v2, %s4544_s28  ;;  %s5430_s28 = smov 8  }
 0xee1   : > { %v2506_v34 = vpop.xlane.xlu0 %2505 }
 0xee2   : > { %v2510_v12 = vsub.f32 %v2452_v25, %v2506_v34 }
 0xee4   : > { %v2512_v1 = vmul.f32 1.442695, %v2510_v12 }
 0xee5   : > { %v2509_v6 = vpop.xlane.xlu1 %2508  ;;  %v2530_v7 = vpop.permute.xlu0 %2529 }
 0xee6   : > { %4478 = vpow2.f32 %v2512_v1  ;;  %v2511_v8 = vsub.f32 %v2498_v27, %v2509_v6  ;;  %4245 = vmatpush3.bf16.msra.mxu0 %v2530_v7 }
 0xee7   : > { %4256 = vmatprep.subr.bf16.mxu0 %v4542_v3 }
 0xee8   : > { %v2514_v35 = vmul.f32 1.442695, %v2511_v8 }
 0xee9   : > { %v2577_v36 = vpop.permute.xlu1 %2576 }
 0xeea   : > { %4480 = vpow2.f32 %v2514_v35  ;;  %4251 = vmatpush3.bf16.msra.mxu1 %v2577_v36 }
 0xeeb   : > { %4262 = vmatprep.subr.bf16.mxu1 %v4542_v3 }
 0xef3   : > { %v4479_v37 = vpop.eup %4478 }
 0xef4   : > { %v2516_v38 = vsel %vm2137_vm5, %v4479_v37, 0.0 }
 0xef5   : > { %2517 = vadd.xlane.f32.xlu0 %v2516_v38 }
 0xef7   : > { %v4481_v39 = vpop.eup %4480 }
 0xef8   : > { %v2519_v40 = vsel %vm2137_vm5, %v4481_v39, 0.0 }
 0xef9   : > { %2520 = vadd.xlane.f32.xlu1 %v2519_v40 }
 0xf0a   : > { %2625 = vrot.lane.b32.xlu1 %v5090_v2, %s4547_s24 }
 0xf0b   : > { %2676 = vrot.lane.b32.xlu0 %v5088_v63, %s4547_s24 }
 0xf0e   : > { %2623 = vrot.lane.b32.xlu1 %v5103_v18, %s4547_s24 }
 0xf0f   : > { %2674 = vrot.lane.b32.xlu0 %v5109_v23, %s4547_s24  ;;  %s5432_s24 = smov 24  }
 0xf7e   : > { %v2518_v41 = vpop.xlane.xlu0 %2517 }
 0xf7f   : > { %4482 = vrcp.f32 %v2518_v41 }
 0xf82   : > { %v2521_v42 = vpop.xlane.xlu1 %2520  ;;  %v2677_v48 = vpop.permute.xlu0 %2676 }
 0xf83   : > { %4484 = vrcp.f32 %v2521_v42  ;;  %v2682_v50 = vsel %vm1232_vm3, %v2677_v48, 0 }
 0xf86   : > { %v2626_v16 = vpop.permute.xlu1 %2625  ;;  %v2675_v52 = vpop.permute.xlu0 %2674 }
 0xf87   : > { %v2631_v46 = vsel %vm1232_vm3, %v2626_v16, 0 }
 0xf8a   : > { %v2624_v51 = vpop.permute.xlu1 %2623 }
 0xf8c   : > { %v4483_v43 = vpop.eup %4482 }
 0xf8d   : > { %v2524_v24 = vmul.f32 %v4483_v43, %v4479_v37 }
 0xf8f   : > { %v2526_v44 = vpack.c.bf16 %v2524_v24, %v2524_v24 }
 0xf90   : > { %v4485_v45 = vpop.eup %4484 }
 0xf91   : > { %4247 = vmatmul.mubr.msk.bf16.vlgmr.msra.gmra.mxu0 %vm2137_vm5, %v2526_v44  ;;  %v2525_v47 = vmul.f32 %v4485_v45, %v4481_v39 }
 0xf92   : > { %4257 = vmatpush3.bf16.xpose.msra.mxu0 %v2631_v46  ;;  %4258 = vmatprep.mubr.msk.bf16.mxu0 %vm4543_vm1, %v4542_v3 }
 0xf93   : > { %v2527_v49 = vpack.c.bf16 %v2525_v47, %v2525_v47  ;;  %4268 = vmatprep.subr.bf16.mxu0 %v4542_v3 }
 0xf95   : > { %4253 = vmatmul.mubr.msk.bf16.vlgmr.msra.gmra.mxu1 %vm2137_vm5, %v2527_v49 }
 0xf96   : > { %4263 = vmatpush3.bf16.xpose.msra.mxu1 %v2682_v50  ;;  %4264 = vmatprep.mubr.msk.bf16.mxu1 %vm4543_vm1, %v4542_v3 }
 0xf97   : > { %4274 = vmatprep.subr.bf16.mxu1 %v4542_v3 }
 0xf99   : > { %4259 = vmatmul.mubr.msk.bf16.vlgmr.msra.gmra.mxu0 %vm1232_vm3, %v2624_v51 }
 0xf9a   : > { %4270 = vmatprep.mubr.msk.bf16.mxu0 %vm4543_vm1, %v4542_v3 }
 0xf9d   : > { %4265 = vmatmul.mubr.msk.bf16.vlgmr.msra.gmra.mxu1 %vm1232_vm3, %v2675_v52 }
 0xf9e   : > { %4276 = vmatprep.mubr.msk.bf16.mxu1 %vm4543_vm1, %v4542_v3 }
0x1051   : > { %v5149_v54 = vpop.f32.mrf.mxu0 }
0x1053   : > { %v4248_v55 = vpop.f32.mrf.mxu0 }
0x1055   : > { %v2572_v56 = vpop.f32.mrf.mxu0  ;;  %v5151_v57 = vpop.f32.mrf.mxu1 }
0x1057   : > { %v4249_v58 = vpop.f32.mrf.mxu0  ;;  %v4254_v59 = vpop.f32.mrf.mxu1 }
0x1059   : > { %v2619_v60 = vpop.f32.mrf.mxu1  ;;  %v2667_v61 = vpop.f32.mrf.mxu0 }
0x105a   : > { %v2724_v62 = vsel %vm2137_vm5, %v2667_v61, -inf }
0x105b   : > { %v4255_v0 = vpop.f32.mrf.mxu1  ;;  %2725 = vmax.xlane.f32.xlu1 %v2724_v62  ;;  %v4260_v4 = vpop.f32.mrf.mxu0 }
0x105d   : > { %v2670_v9 = vpop.f32.mrf.mxu0  ;;  %v2718_v10 = vpop.f32.mrf.mxu1 }
0x105e   : > { %v2727_v13 = vsel %vm2137_vm5, %v2718_v10, -inf }
0x105f   : > { %2728 = vmax.xlane.f32.xlu0 %v2727_v13  ;;  %v4261_v15 = vpop.f32.mrf.mxu0  ;;  %v4266_v14 = vpop.f32.mrf.mxu1 }
0x1061   : > { %v2721_v11 = vpop.f32.mrf.mxu1 }
0x1063   : > { %v4267_v17 = vpop.f32.mrf.mxu1 }
0x106c   : > { %2794 = vrot.lane.b32.xlu1 %v5088_v63, %s4546_s8 }
0x1075   : > { %2748 = vrot.lane.b32.xlu0 %v5090_v2, %s4546_s8  ;;  %s5431_s8 = smov 16  }
0x10e4   : > { %v2726_v19 = vpop.xlane.xlu1 %2725 }
0x10e5   : > { %v2730_v20 = vsub.f32 %v2667_v61, %v2726_v19 }
0x10e7   : > { %v2732_v21 = vmul.f32 1.442695, %v2730_v20 }
0x10e8   : > { %v2729_v25 = vpop.xlane.xlu0 %2728  ;;  %v2795_v26 = vpop.permute.xlu1 %2794 }
0x10e9   : > { %4486 = vpow2.f32 %v2732_v21  ;;  %v2731_v29 = vsub.f32 %v2718_v10, %v2729_v25  ;;  %4275 = vmatpush3.bf16.msra.mxu1 %v2795_v26 }
0x10ea   : > { %4286 = vmatprep.subr.bf16.mxu1 %v4542_v3 }
0x10eb   : > { %v2734_v33 = vmul.f32 1.442695, %v2731_v29 }
0x10ec   : > { %v2749_v27 = vpop.permute.xlu0 %2748 }
0x10ed   : > { %4488 = vpow2.f32 %v2734_v33  ;;  %4269 = vmatpush3.bf16.msra.mxu0 %v2749_v27 }
0x10ee   : > { %4280 = vmatprep.subr.bf16.mxu0 %v4542_v3 }
0x10f6   : > { %v4487_v28 = vpop.eup %4486 }
0x10f7   : > { %v2736_v30 = vsel %vm2137_vm5, %v4487_v28, 0.0 }
0x10f8   : > { %2737 = vadd.xlane.f32.xlu0 %v2736_v30 }
0x10fa   : > { %v4489_v31 = vpop.eup %4488 }
0x10fb   : > { %v2739_v5 = vsel %vm2137_vm5, %v4489_v31, 0.0 }
0x10fc   : > { %2740 = vadd.xlane.f32.xlu1 %v2739_v5 }
0x110d   : > { %2842 = vrot.lane.b32.xlu1 %v5090_v2, %s4550_s1 }
0x110e   : > { %2892 = vrot.lane.b32.xlu0 %v5088_v63, %s4550_s1 }
0x1111   : > { %2840 = vrot.lane.b32.xlu1 %v5103_v18, %s4550_s1 }
0x1112   : > { %2890 = vrot.lane.b32.xlu0 %v5109_v23, %s4550_s1  ;;  %s5433_s1 = scalar_lea.vmem %s5352_s15, %s4705_s6 }
0x1181   : > { %v2738_v32 = vpop.xlane.xlu0 %2737 }
0x1182   : > { %4490 = vrcp.f32 %v2738_v32 }
0x1185   : > { %v2741_v34 = vpop.xlane.xlu1 %2740  ;;  %v2893_v37 = vpop.permute.xlu0 %2892 }
0x1186   : > { %4492 = vrcp.f32 %v2741_v34  ;;  %v2898_v39 = vsel %vm1232_vm3, %v2893_v37, 0 }
0x1189   : > { %v2843_v6 = vpop.permute.xlu1 %2842  ;;  %v2891_v41 = vpop.permute.xlu0 %2890 }
0x118a   : > { %v2848_v35 = vsel %vm1232_vm3, %v2843_v6, 0 }
0x118d   : > { %v2841_v40 = vpop.permute.xlu1 %2840 }
0x118f   : > { %v4491_v12 = vpop.eup %4490 }
0x1190   : > { %v2744_v1 = vmul.f32 %v4491_v12, %v4487_v28 }
0x1192   : > { %v2746_v7 = vpack.c.bf16 %v2744_v1, %v2744_v1 }
0x1193   : > { %v4493_v8 = vpop.eup %4492 }
0x1194   : > { %4271 = vmatmul.mubr.msk.bf16.vlgmr.msra.gmra.mxu0 %vm2137_vm5, %v2746_v7  ;;  %v2745_v36 = vmul.f32 %v4493_v8, %v4489_v31 }
0x1195   : > { %4281 = vmatpush3.bf16.xpose.msra.mxu0 %v2848_v35  ;;  %4282 = vmatprep.mubr.msk.bf16.mxu0 %vm4543_vm1, %v4542_v3 }
0x1196   : > { %v2747_v38 = vpack.c.bf16 %v2745_v36, %v2745_v36  ;;  %4292 = vmatprep.subr.bf16.mxu0 %v4542_v3 }
0x1198   : > { %4277 = vmatmul.mubr.msk.bf16.vlgmr.msra.gmra.mxu1 %vm2137_vm5, %v2747_v38 }
0x1199   : > { %4287 = vmatpush3.bf16.xpose.msra.mxu1 %v2898_v39  ;;  %4288 = vmatprep.mubr.msk.bf16.mxu1 %vm4543_vm1, %v4542_v3 }
0x119a   : > { %4298 = vmatprep.subr.bf16.mxu1 %v4542_v3 }
0x119c   : > { %4283 = vmatmul.mubr.msk.bf16.vlgmr.msra.gmra.mxu0 %vm1232_vm3, %v2841_v40 }
0x119d   : > { %4294 = vmatprep.mubr.msk.bf16.mxu0 %vm4543_vm1, %v4542_v3 }
0x11a0   : > { %4289 = vmatmul.mubr.msk.bf16.vlgmr.msra.gmra.mxu1 %vm1232_vm3, %v2891_v41 }
0x11a1   : > { %4300 = vmatprep.mubr.msk.bf16.mxu1 %vm4543_vm1, %v4542_v3 }
0x1254   : > { %v5187_v42 = vpop.f32.mrf.mxu0 }
0x1256   : > { %v4272_v43 = vpop.f32.mrf.mxu0 }
0x1258   : > { %v2791_v24 = vpop.f32.mrf.mxu0  ;;  %v5189_v16 = vpop.f32.mrf.mxu1 }
0x1259   : > { %v4411_v44 = vpack.i.bf16 %v5189_v16, %v5187_v42 }
0x125a   : > { %v4273_v45 = vpop.f32.mrf.mxu0  ;;  %v4278_v46 = vpop.f32.mrf.mxu1 }
0x125c   : > { %v2837_v47 = vpop.f32.mrf.mxu1  ;;  %v2884_v48 = vpop.f32.mrf.mxu0 }
0x125d   : > { %v2940_v49 = vsel %vm2137_vm5, %v2884_v48, -inf }
0x125e   : > { %v4279_v50 = vpop.f32.mrf.mxu1  ;;  %2941 = vmax.xlane.f32.xlu1 %v2940_v49  ;;  %v4284_v51 = vpop.f32.mrf.mxu0 }
0x1260   : > { %v2887_v52 = vpop.f32.mrf.mxu0  ;;  %v2934_v55 = vpop.f32.mrf.mxu1 }
0x1261   : > { %v2943_v56 = vsel %vm2137_vm5, %v2934_v55, -inf }
0x1262   : > { %2944 = vmax.xlane.f32.xlu0 %v2943_v56  ;;  %v4285_v58 = vpop.f32.mrf.mxu0  ;;  %v4290_v59 = vpop.f32.mrf.mxu1 }
0x1264   : > { %v2937_v60 = vpop.f32.mrf.mxu1 }
0x1266   : > { %v4291_v61 = vpop.f32.mrf.mxu1 }
0x126f   : > { %3010 = vrot.lane.b32.xlu1 %v5088_v63, %s4549_s17 }
0x1278   : > { %2964 = vrot.lane.b32.xlu0 %v5090_v2, %s4549_s17 }
0x12e7   : > { %v2942_v62 = vpop.xlane.xlu1 %2941 }
0x12e8   : > { %v2946_v0 = vsub.f32 %v2884_v48, %v2942_v62 }
0x12ea   : > { %v2948_v4 = vmul.f32 1.442695, %v2946_v0 }
0x12eb   : > { %v2945_v9 = vpop.xlane.xlu0 %2944  ;;  %v3011_v10 = vpop.permute.xlu1 %3010 }
0x12ec   : > { %4494 = vpow2.f32 %v2948_v4  ;;  %v2947_v13 = vsub.f32 %v2934_v55, %v2945_v9  ;;  %4299 = vmatpush3.bf16.msra.mxu1 %v3011_v10 }
0x12ed   : > { %4310 = vmatprep.subr.bf16.mxu1 %v4542_v3 }
0x12ee   : > { %v2950_v15 = vmul.f32 1.442695, %v2947_v13 }
0x12ef   : > { %v2965_v14 = vpop.permute.xlu0 %2964 }
0x12f0   : > { %4496 = vpow2.f32 %v2950_v15  ;;  %4293 = vmatpush3.bf16.msra.mxu0 %v2965_v14  ;;  %v4434_v15 = vld [vmem:[%s4755_s7 + $0x8] sm:$0xff]   ;;  %v4435_v14 = vld [vmem:[%s4755_s7] sm:$0xff]   ;;  %s5441_s7 = sld [smem:[#allocation23_spill]] }
0x12f1   : > { %4304 = vmatprep.subr.bf16.mxu0 %v4542_v3 }
0x12f6   : > { %s5442_s17 = scalar_lea.vmem %s5441_s7, %s4705_s6 }
0x12f9   : > { %v4495_v11 = vpop.eup %4494 }
0x12fa   : > { %v2952_v17 = vsel %vm2137_vm5, %v4495_v11, 0.0 }
0x12fb   : > { %2953 = vadd.xlane.f32.xlu0 %v2952_v17 }
0x12fd   : > { %v4497_v19 = vpop.eup %4496 }
0x12fe   : > { %v2955_v20 = vsel %vm2137_vm5, %v4497_v19, 0.0 }
0x12ff   : > { %2956 = vadd.xlane.f32.xlu1 %v2955_v20 }
0x1310   : > { %3058 = vrot.lane.b32.xlu1 %v5090_v2, %s4553_s5 }
0x1311   : > { %3108 = vrot.lane.b32.xlu0 %v5088_v63, %s4553_s5 }
0x1314   : > { %3056 = vrot.lane.b32.xlu1 %v5103_v18, %s4553_s5 }
0x1315   : > { %3106 = vrot.lane.b32.xlu0 %v5109_v23, %s4553_s5  ;;  %s5434_s5 = sld [smem:[#allocation19_spill]] }
0x131b   : > { %s5435_s12 = scalar_lea.vmem %s5434_s5, %s4705_s6 }
0x1384   : > { %v2954_v21 = vpop.xlane.xlu0 %2953 }
0x1385   : > { %4498 = vrcp.f32 %v2954_v21 }
0x1388   : > { %v2957_v25 = vpop.xlane.xlu1 %2956  ;;  %v3109_v5 = vpop.permute.xlu0 %3108 }
0x1389   : > { %4500 = vrcp.f32 %v2957_v25  ;;  %v3114_v23 = vsel %vm1232_vm3, %v3109_v5, 0 }
0x138c   : > { %v3059_v33 = vpop.permute.xlu1 %3058  ;;  %v3107_v34 = vpop.permute.xlu0 %3106 }
0x138d   : > { %v3064_v30 = vsel %vm1232_vm3, %v3059_v33, 0 }
0x1390   : > { %v3057_v32 = vpop.permute.xlu1 %3056 }
0x1392   : > { %v4499_v26 = vpop.eup %4498 }
0x1393   : > { %v2960_v29 = vmul.f32 %v4499_v26, %v4495_v11 }
0x1395   : > { %v2962_v27 = vpack.c.bf16 %v2960_v29, %v2960_v29 }
0x1396   : > { %v4501_v28 = vpop.eup %4500 }
0x1397   : > { %4295 = vmatmul.mubr.msk.bf16.vlgmr.msra.gmra.mxu0 %vm2137_vm5, %v2962_v27  ;;  %v2961_v31 = vmul.f32 %v4501_v28, %v4497_v19 }
0x1398   : > { %4305 = vmatpush3.bf16.xpose.msra.mxu0 %v3064_v30  ;;  %4306 = vmatprep.mubr.msk.bf16.mxu0 %vm4543_vm1, %v4542_v3 }
0x1399   : > { %v2963_v18 = vpack.c.bf16 %v2961_v31, %v2961_v31  ;;  %4316 = vmatprep.subr.bf16.mxu0 %v4542_v3 }
0x139b   : > { %4301 = vmatmul.mubr.msk.bf16.vlgmr.msra.gmra.mxu1 %vm2137_vm5, %v2963_v18 }
0x139c   : > { %4311 = vmatpush3.bf16.xpose.msra.mxu1 %v3114_v23  ;;  %4312 = vmatprep.mubr.msk.bf16.mxu1 %vm4543_vm1, %v4542_v3 }
0x139d   : > { %4322 = vmatprep.subr.bf16.mxu1 %v4542_v3 }
0x139f   : > { %4307 = vmatmul.mubr.msk.bf16.vlgmr.msra.gmra.mxu0 %vm1232_vm3, %v3057_v32 }
0x13a0   : > { %4318 = vmatprep.mubr.msk.bf16.mxu0 %vm4543_vm1, %v4542_v3 }
0x13a3   : > { %4313 = vmatmul.mubr.msk.bf16.vlgmr.msra.gmra.mxu1 %vm1232_vm3, %v3107_v34 }
0x13a4   : > { %4324 = vmatprep.mubr.msk.bf16.mxu1 %vm4543_vm1, %v4542_v3 }
0x1457   : > { %v3004_v12 = vpop.f32.mrf.mxu0 }
0x1459   : > { %v4296_v1 = vpop.f32.mrf.mxu0 }
0x145b   : > { %v3007_v6 = vpop.f32.mrf.mxu0  ;;  %v3050_v7 = vpop.f32.mrf.mxu1 }
0x145c   : > { %v4416_v8 = vpack.i.bf16 %v3050_v7, %v3004_v12 }
0x145d   : > { %v4297_v35 = vpop.f32.mrf.mxu0  ;;  %v4302_v36 = vpop.f32.mrf.mxu1 }
0x145f   : > { %v3053_v37 = vpop.f32.mrf.mxu1  ;;  %v3100_v38 = vpop.f32.mrf.mxu0 }
0x1460   : > { %v3156_v39 = vsel %vm2137_vm5, %v3100_v38, -inf }
0x1461   : > { %v4303_v40 = vpop.f32.mrf.mxu1  ;;  %3157 = vmax.xlane.f32.xlu1 %v3156_v39  ;;  %v4308_v41 = vpop.f32.mrf.mxu0 }
0x1463   : > { %v3103_v43 = vpop.f32.mrf.mxu0  ;;  %v3150_v24 = vpop.f32.mrf.mxu1 }
0x1464   : > { %v3159_v45 = vsel %vm2137_vm5, %v3150_v24, -inf }
0x1465   : > { %3160 = vmax.xlane.f32.xlu0 %v3159_v45  ;;  %v4309_v46 = vpop.f32.mrf.mxu0  ;;  %v4314_v47 = vpop.f32.mrf.mxu1 }
0x1467   : > { %v3153_v48 = vpop.f32.mrf.mxu1 }
0x1469   : > { %v4315_v49 = vpop.f32.mrf.mxu1 }
0x14ea   : > { %v3158_v50 = vpop.xlane.xlu1 %3157 }
0x14eb   : > { %v3162_v51 = vsub.f32 %v3100_v38, %v3158_v50 }
0x14ed   : > { %v3164_v52 = vmul.f32 1.442695, %v3162_v51 }
0x14ee   : > { %v3161_v55 = vpop.xlane.xlu0 %3160 }
0x14ef   : > { %4502 = vpow2.f32 %v3164_v52  ;;  %v3163_v56 = vsub.f32 %v3150_v24, %v3161_v55 }
0x14f1   : > { %v3166_v58 = vmul.f32 1.442695, %v3163_v56 }
0x14f3   : > { %4504 = vpow2.f32 %v3166_v58 }
0x14fc   : > { %v4503_v59 = vpop.eup %4502 }
0x14fd   : > { %v3168_v60 = vsel %vm2137_vm5, %v4503_v59, 0.0 }
0x14fe   : > { %3169 = vadd.xlane.f32.xlu0 %v3168_v60  ;;  %v4438_v60 = vld [vmem:[%s4782_s22 + $0x18] sm:$0xff]  }
0x1500   : > { %v4505_v61 = vpop.eup %4504 }
0x1501   : > { %v3171_v62 = vsel %vm2137_vm5, %v4505_v61, 0.0 }
0x1502   : > { %3172 = vadd.xlane.f32.xlu1 %v3171_v62 }
0x1513   : > { %3226 = vrot.lane.b32.xlu1 %v5088_v63, %s4552_s30 }
0x1514   : > { %3180 = vrot.lane.b32.xlu0 %v5090_v2, %s4552_s30  ;;  %s5443_s30 = sld [smem:[#allocation24_spill]] }
0x1517   : > { %4412 = vrot.lane.b32.xlu1 %v4411_v44, %s5430_s28 }
0x1518   : > { %4417 = vrot.lane.b32.xlu0 %v4416_v8, %s5431_s8 }
0x151a   : > { %s5444_s5 = scalar_lea.vmem %s5443_s30, %s4705_s6 }
0x1587   : > { %v3170_v0 = vpop.xlane.xlu0 %3169 }
0x1588   : > { %4506 = vrcp.f32 %v3170_v0 }
0x158b   : > { %v3181_v4 = vpop.permute.xlu0 %3180  ;;  %v3173_v9 = vpop.xlane.xlu1 %3172 }
0x158c   : > { %4508 = vrcp.f32 %v3173_v9  ;;  %4317 = vmatpush3.bf16.msra.mxu0 %v3181_v4 }
0x158d   : > { %4328 = vmatprep.subr.bf16.mxu0 %v4542_v3 }
0x158f   : > { %v3227_v63 = vpop.permute.xlu1 %3226  ;;  %v4418_v31 = vpop.permute.xlu0 %4417 }
0x1590   : > { %4323 = vmatpush3.bf16.msra.mxu1 %v3227_v63  ;;  %v4420_v23 = vunpack.i.h.bf16 %v4418_v31  ;;  %v4419_v32 = vunpack.i.l.bf16 %v4418_v31 }
0x1591   : > { %4336 = vmatprep.subr.bf16.mxu1 %v4542_v3 }
0x1593   : > { %v4413_v27 = vpop.permute.xlu1 %4412 }
0x1594   : > { %v4415_v28 = vunpack.i.h.bf16 %v4413_v27  ;;  %v4414_v30 = vunpack.i.l.bf16 %v4413_v27 }
0x1595   : > { %v4507_v2 = vpop.eup %4506 }
0x1596   : > { %v3176_v10 = vmul.f32 %v4507_v2, %v4503_v59  ;;  %v3297_v5 = vsel %vm1232_vm3, %v5151_v57, %v4415_v28  ;;  %v3296_v18 = vsel %vm1232_vm3, %v5149_v54, %v4414_v30  ;;  %v3987_v54 = vld [vmem:[%s5433_s1] ss:$0 sm:$0xff] }
0x1597   : > { %v3298_v6 = vsel %vm2137_vm5, %v3296_v18, %v4419_v32  ;;  %v3299_v7 = vsel %vm2137_vm5, %v3297_v5, %v4420_v23  ;;  %v4437_v59 = vld [vmem:[%s4772_s0] sm:$0xff]  }
0x1598   : > { %v3178_v42 = vpack.c.bf16 %v3176_v10, %v3176_v10 }
0x1599   : > { %v4509_v16 = vpop.eup %4508 }
0x159a   : > { %4319 = vmatmul.mubr.msk.bf16.vlgmr.msra.gmra.mxu0 %vm2137_vm5, %v3178_v42  ;;  %v3177_v44 = vmul.f32 %v4509_v16, %v4505_v61  ;;  %v3991_v42 = vld [vmem:[%s5435_s12] ss:$0 sm:$0xff] }
0x159b   : > { %4332 = vmatprep.mubr.msk.bf16.mxu0 %vm4543_vm1, %v4542_v3  ;;  %4329 = vmatpush3.bf16.msra.mxu0 %v4434_v15  ;;  %v3992_v15 = vld [vmem:[%s5437_s16] ss:$0 sm:$0xff] }
0x159c   : > { %v3179_v13 = vpack.c.bf16 %v3177_v44, %v3177_v44  ;;  %4330 = vmatprep.subr.bf16.mxu0 %v4542_v3 }
0x159e   : > { %4325 = vmatmul.mubr.msk.bf16.vlgmr.msra.gmra.mxu1 %vm2137_vm5, %v3179_v13 }
0x159f   : > { %4340 = vmatprep.mubr.msk.bf16.mxu1 %vm4543_vm1, %v4542_v3  ;;  %4331 = vmatpush3.bf16.msra.mxu0 %v4435_v14 }
0x15a0   : > { %4344 = vmatprep.subr.bf16.mxu0 %v4542_v3 }
0x165a   : > { %v3220_v11 = vpop.f32.mrf.mxu0 }
0x165c   : > { %v4320_v17 = vpop.f32.mrf.mxu0 }
0x165e   : > { %v3223_v19 = vpop.f32.mrf.mxu0  ;;  %v3266_v20 = vpop.f32.mrf.mxu1 }
0x165f   : > { %v4421_v21 = vpack.i.bf16 %v3266_v20, %v3220_v11  ;;  %v4439_v20 = vld [vmem:[%s4782_s22 + $0x10] sm:$0xff]  }
0x1660   : > { %v4321_v25 = vpop.f32.mrf.mxu0  ;;  %v4326_v26 = vpop.f32.mrf.mxu1 }
0x1661   : > { %4422 = vrot.lane.b32.xlu1 %v4421_v21, %s5432_s24  ;;  %v4440_v21 = vld [vmem:[%s4782_s22 + $0x8] sm:$0xff]   ;;  %v4441_v25 = vld [vmem:[%s4782_s22] sm:$0xff]   ;;  %s5439_s22 = sld [smem:[#allocation22_spill]] }
0x1662   : > { %v3269_v29 = vpop.f32.mrf.mxu1  ;;  %v3993_v26 = vld [vmem:[%s5438_s21] ss:$0 sm:$0xff] }
0x1664   : > { %v4327_v33 = vpop.f32.mrf.mxu1 }
0x1667   : > { %s5440_s28 = scalar_lea.vmem %s5439_s22, %s4705_s6 }
0x16d3   : > { %v4423_v34 = vpop.permute.xlu1 %4422 }
0x16d4   : > { %v4425_v12 = vunpack.i.h.bf16 %v4423_v34  ;;  %v4424_v1 = vunpack.i.l.bf16 %v4423_v34 }
0x16d6   : > { %v3301_v8 = vsel %vm2140_vm6, %v3299_v7, %v4425_v12  ;;  %v3300_v35 = vsel %vm2140_vm6, %v3298_v6, %v4424_v1 }
0x16d7   : > { %v3302_v36 = vpack.c.bf16 %v3301_v8, %v3300_v35 }
0x16d9   : > { %4333 = vmatmul.mubr.msk.bf16.vlgmr.msra.gmra.mxu0 %vm1178_vm2, %v3302_v36 }
0x16da   : > { %4352 = vmatprep.mubr.msk.bf16.mxu0 %vm4543_vm1, %v4542_v3  ;;  %4345 = vmatpush3.bf16.msra.mxu0 %v4438_v60 }
0x16db   : > { %4346 = vmatprep.subr.bf16.mxu0 %v4542_v3 }
0x16de   : > { %4347 = vmatpush3.bf16.msra.mxu0 %v4439_v20 }
0x16df   : > { %4348 = vmatprep.subr.bf16.mxu0 %v4542_v3 }
0x16e2   : > { %4349 = vmatpush3.bf16.msra.mxu0 %v4440_v21 }
0x16e3   : > { %4350 = vmatprep.subr.bf16.mxu0 %v4542_v3 }
0x16e6   : > { %4351 = vmatpush3.bf16.msra.mxu0 %v4441_v25 }
0x1799   : > { %v3363_v57 = vpop.f32.mrf.mxu0 }
0x179a   : > { %v3364_v37 = vadd.f32 %v3987_v54, %v3363_v57 }
0x179b   : > { %v4334_v38 = vpop.f32.mrf.mxu0 }
0x179c   : > { %v3372_v39 = vadd.f32 %v3364_v37, %v5074_v53 }
0x179d   : > { %v3366_v40 = vpop.f32.mrf.mxu0 }
0x179e   : > { %v3367_v41 = vadd.f32 %v3987_v54, %v3366_v40  ;;  %v3374_v43 = vsel %vm1178_vm2, %v3372_v39, 0.0 }
0x179f   : > { %3375 = vadd.xlane.f32.xlu0 %v3374_v43  ;;  %v4335_v24 = vpop.f32.mrf.mxu0 }
0x17a0   : > { %v3373_v45 = vadd.f32 %v3367_v41, %v5076_v22  ;;  %v4436_v22 = vld [vmem:[%s4772_s0 + $0x8] sm:$0xff]  }
0x17a1   : > { %4337 = vmatpush3.bf16.msra.mxu1 %v4436_v22 }
0x17a2   : > { %v3377_v46 = vsel %vm1178_vm2, %v3373_v45, 0.0  ;;  %4338 = vmatprep.subr.bf16.mxu1 %v4542_v3  ;;  %v3997_v3 = vld [vmem:[%s5440_s28] ss:$0 sm:$0xff] }
0x17a3   : > { %3378 = vadd.xlane.f32.xlu1 %v3377_v46 }
0x17a5   : > { %4339 = vmatpush3.bf16.msra.mxu1 %v4437_v59 }
0x1828   : > { %v3376_v47 = vpop.xlane.xlu0 %3375 }
0x1829   : > { %v3380_v48 = vmul.f32 0.03125, %v3376_v47 }
0x182b   : > { %v3382_v49 = vsub.f32 %v3372_v39, %v3380_v48 }
0x182c   : > { %v3379_v50 = vpop.xlane.xlu1 %3378 }
0x182d   : > { %v3381_v51 = vmul.f32 0.03125, %v3379_v50  ;;  %v3384_v53 = vmul.f32 %v3382_v49, %v3382_v49 }
0x182f   : > { %v3383_v52 = vsub.f32 %v3373_v45, %v3381_v51  ;;  %v3386_v55 = vsel %vm1178_vm2, %v3384_v53, 0.0 }
0x1830   : > { %3387 = vadd.xlane.f32.xlu0 %v3386_v55  ;;  %v4003_v55 = vld [vmem:[%s5442_s17] ss:$0 sm:$0xff] }
0x1831   : > { %v3385_v56 = vmul.f32 %v3383_v52, %v3383_v52 }
0x1833   : > { %v3389_v58 = vsel %vm1178_vm2, %v3385_v56, 0.0 }
0x1834   : > { %3390 = vadd.xlane.f32.xlu0 %v3389_v58  ;;  %v4004_v58 = vld [vmem:[%s5444_s5] ss:$0 sm:$0xff] }
0x18b9   : > { %v3388_v61 = vpop.xlane.xlu0 %3387 }
0x18ba   : > { %v3392_v62 = vmul.f32 0.03125, %v3388_v61 }
0x18bc   : > { %v3394_v0 = vadd.f32 1e-05, %v3392_v62 }
0x18bd   : > { %v3391_v4 = vpop.xlane.xlu0 %3390 }
0x18be   : > { %4510 = vrsqrt.f32 %v3394_v0  ;;  %v3393_v9 = vmul.f32 0.03125, %v3391_v4 }
0x18c0   : > { %v3395_v63 = vadd.f32 1e-05, %v3393_v9 }
0x18c2   : > { %4512 = vrsqrt.f32 %v3395_v63 }
0x18cb   : > { %v4511_v2 = vpop.eup %4510 }
0x18cc   : > { %v3398_v10 = vmul.f32 %v4511_v2, %v3382_v49 }
0x18ce   : > { %v3406_v13 = vmul.f32 %v3991_v42, %v3398_v10 }
0x18cf   : > { %v4513_v16 = vpop.eup %4512 }
0x18d0   : > { %v3399_v44 = vmul.f32 %v4513_v16, %v3383_v52  ;;  %v3414_v11 = vadd.f32 %v3992_v15, %v3406_v13 }
0x18d2   : > { %v3407_v14 = vmul.f32 %v3991_v42, %v3399_v44 }
0x18d4   : > { %v3415_v17 = vadd.f32 %v3992_v15, %v3407_v14 }
0x18d6   : > { %v3416_v19 = vpack.c.bf16 %v3415_v17, %v3414_v11 }
0x18d8   : > { %4341 = vmatmul.mubr.msk.bf16.vlgmr.msra.gmra.mxu1 %vm1178_vm2, %v3416_v19 }
0x1998   : > { %v3477_v29 = vpop.f32.mrf.mxu1 }
0x1999   : > { %v3478_v27 = vadd.f32 %v3993_v26, %v3477_v29 }
0x199a   : > { %v4342_v33 = vpop.f32.mrf.mxu1 }
0x199b   : > { %v3484_v5 = vmax.f32 %v3478_v27, 0.0 }
0x199c   : > { %v3480_v28 = vpop.f32.mrf.mxu1 }
0x199d   : > { %v3481_v30 = vadd.f32 %v3993_v26, %v3480_v28 }
0x199e   : > { %v4343_v31 = vpop.f32.mrf.mxu1 }
0x199f   : > { %v3485_v18 = vmax.f32 %v3481_v30, 0.0 }
0x19a1   : > { %v3486_v23 = vpack.c.bf16 %v3485_v18, %v3484_v5 }
0x19a3   : > { %4353 = vmatmul.mubr.msk.bf16.vlgmr.msra.gmra.mxu0 %vm3526_vm7, %v3486_v23 }
0x1a63   : > { %v3564_v32 = vpop.f32.mrf.mxu0 }
0x1a64   : > { %v3565_v34 = vadd.f32 %v3997_v3, %v3564_v32 }
0x1a65   : > { %v4354_v12 = vpop.f32.mrf.mxu0 }
0x1a66   : > { %v3573_v1 = vadd.f32 %v3565_v34, %v3414_v11 }
0x1a67   : > { %v3567_v6 = vpop.f32.mrf.mxu0 }
0x1a68   : > { %v3568_v7 = vadd.f32 %v3997_v3, %v3567_v6  ;;  %v3575_v8 = vsel %vm1178_vm2, %v3573_v1, 0.0 }
0x1a69   : > { %3576 = vadd.xlane.f32.xlu1 %v3575_v8  ;;  %v4355_v35 = vpop.f32.mrf.mxu0 }
0x1a6a   : > { %v3574_v36 = vadd.f32 %v3568_v7, %v3415_v17 }
0x1a6c   : > { %v3578_v54 = vsel %vm1178_vm2, %v3574_v36, 0.0 }
0x1a6d   : > { %3579 = vadd.xlane.f32.xlu0 %v3578_v54 }
0x1af2   : > { %v3577_v57 = vpop.xlane.xlu1 %3576 }
0x1af3   : > { %v3581_v37 = vmul.f32 0.03125, %v3577_v57 }
0x1af5   : > { %v3583_v38 = vsub.f32 %v3573_v1, %v3581_v37 }
0x1af6   : > { %v3580_v39 = vpop.xlane.xlu0 %3579 }
0x1af7   : > { %v3582_v40 = vmul.f32 0.03125, %v3580_v39  ;;  %v3585_v41 = vmul.f32 %v3583_v38, %v3583_v38 }
0x1af9   : > { %v3584_v43 = vsub.f32 %v3574_v36, %v3582_v40  ;;  %v3587_v24 = vsel %vm1178_vm2, %v3585_v41, 0.0 }
0x1afa   : > { %3588 = vadd.xlane.f32.xlu1 %v3587_v24 }
0x1afb   : > { %v3586_v45 = vmul.f32 %v3584_v43, %v3584_v43 }
0x1afd   : > { %v3590_v46 = vsel %vm1178_vm2, %v3586_v45, 0.0 }
0x1afe   : > { %3591 = vadd.xlane.f32.xlu0 %v3590_v46 }
0x1b83   : > { %v3589_v47 = vpop.xlane.xlu1 %3588 }
0x1b84   : > { %v3593_v48 = vmul.f32 0.03125, %v3589_v47 }
0x1b86   : > { %v3595_v49 = vadd.f32 1e-05, %v3593_v48 }
0x1b87   : > { %v3592_v50 = vpop.xlane.xlu0 %3591 }
0x1b88   : > { %4514 = vrsqrt.f32 %v3595_v49  ;;  %v3594_v51 = vmul.f32 0.03125, %v3592_v50 }
0x1b8a   : > { %v3596_v53 = vadd.f32 1e-05, %v3594_v51 }
0x1b8c   : > { %4516 = vrsqrt.f32 %v3596_v53 }
0x1b95   : > { %v4515_v52 = vpop.eup %4514 }
0x1b96   : > { %v3599_v56 = vmul.f32 %v4515_v52, %v3583_v38 }
0x1b98   : > { %v3607_v22 = vmul.f32 %v4003_v55, %v3599_v56 }
0x1b99   : > { %v4517_v59 = vpop.eup %4516 }
0x1b9a   : > { %v3615_v60 = vadd.f32 %v4004_v58, %v3607_v22  ;;  %v3600_v61 = vmul.f32 %v4517_v59, %v3584_v43 }
0x1b9c   : > { %3617 = vst.msk [vmem:[%s5416_s2] sm:$0xff] %vm1178_vm2, %v3615_v60  ;;  %v3608_v62 = vmul.f32 %v4003_v55, %v3600_v61 }
0x1b9e   : > { %v3616_v0 = vadd.f32 %v4004_v58, %v3608_v62 }
0x1ba0   : > { %3618 = vst.msk [vmem:[%s5416_s2 + $0x8] sm:$0xff] %vm1178_vm2, %v3616_v0 }
0x1ba1 PF: > { %s5445_s16 = sld [smem:[#allocation4_spill]] }
0x1ba2   : > { %s5446_s5 = sld [smem:[#allocation3_spill]] }
0x1ba3   : > { %s5447_s26 = sld [smem:[#allocation5_spill]] }
0x1ba7   : > { %s34_s27 = sadd.s32 1, %s5445_s16  }
0x1ba8   : > { %p31_p6 = scmp.ge.s32.totalorder %s34_s27, 4  }
0x1baa   :  { %33 = sbr.rel (!%p31_p6) target bundleno = 20 (0x14), region = 216 }

</bundles_post_ra>
